<compile_context>
chip_gen: v7x
topology: tpu7x:2x2x1
jax: 0.10.0
libtpu: 0.0.40
codegen_flags: <defaults>
</compile_context>

<pallas_src>
import functools
import math

import jax
import jax.numpy as jnp
from jax.experimental import pallas as pl
from jax.experimental.pallas import tpu as pltpu

NEG_INF = -1e9


def _round_up(x, m):
    return ((x + m - 1) // m) * m


def _layer_norm(x, gamma, beta, eps=1e-5):
    mean = jnp.mean(x, axis=-1, keepdims=True)
    var = jnp.mean(jnp.square(x - mean), axis=-1, keepdims=True)
    return (x - mean) * jax.lax.rsqrt(var + eps) * gamma + beta


def fused_layers_kernel(x_ref, causal_ref, ln1_g_ref, ln1_b_ref, wqkv_ref, bqkv_ref,
                        wo_ref, bo_ref, ln2_g_ref, ln2_b_ref,
                        wfc_ref, bfc_ref, wpr_ref, bpr_ref,
                        o_ref, ctx_ref, *, TB, L, D, H):
    """grid = (batch_tiles, n_layers); one CLIP ResidualAttentionBlock per grid step.

    The residual stream is carried in o_ref (output block index constant along the
    layer axis) and initialised from the embedded tokens at layer 0.
    """
    hd = D // H
    scale = 1.0 / math.sqrt(hd)
    rows = TB * L

    @pl.when(pl.program_id(1) == 0)
    def _():
        o_ref[...] = x_ref[...]

    x = o_ref[...]                                       # (rows, D) f32 residual stream

    # ---- multi-head self-attention branch ----
    h1 = _layer_norm(x, ln1_g_ref[0], ln1_b_ref[0]).astype(jnp.bfloat16)
    qkv = jnp.dot(h1, wqkv_ref[0], preferred_element_type=jnp.float32) + bqkv_ref[0]
    causal = causal_ref[...]                             # (L, L) additive mask (hoisted)

    # Per-head attention: contract hd (not D); heads carved out with static lane slices
    # of the fused QKV output, results re-assembled into a (rows, D) scratch.
    for h in range(H):
        lo = h * hd
        q_h = qkv[:, lo:lo + hd].reshape(TB, L, hd).astype(jnp.bfloat16)
        k_h = qkv[:, D + lo:D + lo + hd].reshape(TB, L, hd).astype(jnp.bfloat16)
        v_h = qkv[:, 2 * D + lo:2 * D + lo + hd].reshape(TB, L, hd).astype(jnp.bfloat16)
        s = jnp.einsum('bqd,bkd->bqk', q_h, k_h,
                       preferred_element_type=jnp.float32) * scale + causal[None]
        s = s - jnp.max(s, axis=-1, keepdims=True)
        p = jnp.exp(s)
        p = p * pl.reciprocal(jnp.sum(p, axis=-1, keepdims=True), approx=True)
        ctx_h = jnp.einsum('bqk,bkd->bqd', p.astype(jnp.bfloat16), v_h,
                           preferred_element_type=jnp.float32)       # (TB, L, hd)
        ctx_ref[:, lo:lo + hd] = ctx_h.reshape(rows, hd)

    attn = jnp.dot(ctx_ref[...].astype(jnp.bfloat16), wo_ref[0],
                   preferred_element_type=jnp.float32) + bo_ref[0]
    x = x + attn

    # ---- MLP branch (Linear -> QuickGELU -> Linear) ----
    h2 = _layer_norm(x, ln2_g_ref[0], ln2_b_ref[0]).astype(jnp.bfloat16)
    fc = jnp.dot(h2, wfc_ref[0], preferred_element_type=jnp.float32) + bfc_ref[0]
    fc = fc * jax.nn.sigmoid(1.702 * fc)                 # QuickGELU (f32)
    mlp = jnp.dot(fc.astype(jnp.bfloat16), wpr_ref[0],
                  preferred_element_type=jnp.float32) + bpr_ref[0]
    o_ref[...] = x + mlp


def final_proj_kernel(x_ref, g_ref, b_ref, proj_ref, o_ref):
    """ln_final on the gathered EOT rows, then @ text_projection (bf16 MXU, f32 acc)."""
    h = _layer_norm(x_ref[...], g_ref[...], b_ref[...])
    o_ref[...] = jnp.dot(h.astype(jnp.bfloat16), proj_ref[...],
                         preferred_element_type=jnp.float32)


def make_params(key, vocab, L, D, n_layers):
    def norm(k, shape, s=0.02, dtype=jnp.float32):
        return (s * jax.random.normal(k, shape)).astype(dtype)

    keys = jax.random.split(key, 7)
    bf16 = jnp.bfloat16
    return {
        'tok_emb': norm(keys[0], (vocab, D)),
        'pos_emb': norm(keys[1], (L, D), 0.01),
        'lnf_g': jnp.ones((1, D), jnp.float32),
        'lnf_b': jnp.zeros((1, D), jnp.float32),
        'text_proj': norm(keys[2], (D, D), D ** -0.5, dtype=bf16),
        # stacked per-layer params (leading axis = layer); MXU weights in bf16
        'ln1_g': jnp.ones((n_layers, 1, D), jnp.float32),
        'ln1_b': jnp.zeros((n_layers, 1, D), jnp.float32),
        'w_qkv': norm(keys[3], (n_layers, D, 3 * D), dtype=bf16),   # fused q|k|v
        'b_qkv': jnp.zeros((n_layers, 1, 3 * D), jnp.float32),
        'wo': norm(keys[4], (n_layers, D, D), dtype=bf16),
        'bo': jnp.zeros((n_layers, 1, D), jnp.float32),
        'ln2_g': jnp.ones((n_layers, 1, D), jnp.float32),
        'ln2_b': jnp.zeros((n_layers, 1, D), jnp.float32),
        'wfc': norm(keys[5], (n_layers, D, 4 * D), dtype=bf16),
        'bfc': jnp.zeros((n_layers, 1, 4 * D), jnp.float32),
        'wpr': norm(keys[6], (n_layers, 4 * D, D), dtype=bf16),
        'bpr': jnp.zeros((n_layers, 1, D), jnp.float32),
    }


def _choose_batch_tile(B, Lp, target_rows=1024):
    """Largest divisor of B with TB*Lp <= target_rows, keeping >= 2 tiles (megacore)."""
    divs = [d for d in range(1, B + 1) if B % d == 0]
    cands = [d for d in divs if d * Lp <= max(target_rows, Lp)]
    tb = max(cands) if cands else 1
    if B // tb == 1 and B > 1:
        smaller = [d for d in divs if d < tb]
        if smaller:
            tb = max(smaller)
    return tb


def clip_text_encode(text, params, *, n_heads, batch_tile=None):
    B, L = text.shape
    D = params['tok_emb'].shape[1]
    n_layers = params['w_qkv'].shape[0]
    H = n_heads
    assert D % H == 0

    # Pad L so rows = TB*Lp is sublane-friendly; for real CLIP (L=77) pad to 128 so
    # QK^T / softmax tensors are lane-dense as well.
    Lp = _round_up(L, 8) if L <= 64 else _round_up(L, 128)
    pos = params['pos_emb']
    if Lp != L:
        text_pad = jnp.pad(text, ((0, 0), (0, Lp - L)))
        pos = jnp.pad(pos, ((0, Lp - L), (0, 0)))
    else:
        text_pad = text

    # glue: token embedding gather + positional embedding add (data-dependent gather)
    x = jnp.take(params['tok_emb'], text_pad, axis=0) + pos[None, :, :]
    x2 = x.reshape(B * Lp, D).astype(jnp.float32)

    if batch_tile is None:
        batch_tile = _choose_batch_tile(B, Lp)
    assert B % batch_tile == 0
    TB = batch_tile
    n_bt = B // TB
    rows = TB * Lp

    # grid-invariant causal additive mask (hoisted out of the kernel body)
    idx = jnp.arange(Lp)
    causal = jnp.where(idx[None, :] <= idx[:, None], 0.0, NEG_INF).astype(jnp.float32)

    act_map = lambda bt, l: (bt, 0)
    w_map = lambda bt, l: (l, 0, 0)
    vec = lambda n: pl.BlockSpec((1, 1, n), w_map)
    mat = lambda r, c: pl.BlockSpec((1, r, c), w_map)

    in_specs = [
        pl.BlockSpec((rows, D), act_map),                # residual-stream init
        pl.BlockSpec((Lp, Lp), lambda bt, l: (0, 0)),    # causal mask (constant block)
        vec(D), vec(D),                                  # ln1 gamma/beta
        mat(D, 3 * D), vec(3 * D),                       # fused QKV weight/bias
        mat(D, D), vec(D),                               # attn out-proj weight/bias
        vec(D), vec(D),                                  # ln2 gamma/beta
        mat(D, 4 * D), vec(4 * D),                       # mlp.c_fc
        mat(4 * D, D), vec(D),                           # mlp.c_proj
    ]
    out_spec = pl.BlockSpec((rows, D), act_map)

    weight_names = ('ln1_g', 'ln1_b', 'w_qkv', 'b_qkv', 'wo', 'bo',
                    'ln2_g', 'ln2_b', 'wfc', 'bfc', 'wpr', 'bpr')
    weights = [params[k] for k in weight_names]
    weight_bytes = sum(int(w.size) * w.dtype.itemsize for w in weights)
    per_layer_weight_bytes = weight_bytes // n_layers

    # VMEM budget: double-buffered activation & layer-weight blocks + in-kernel temps.
    act_bytes = rows * D * 4
    temp_bytes = (rows * 3 * D * 6 +          # qkv f32 + per-head bf16 slices
                  rows * 4 * D * 6 +          # fc f32 + bf16 copy
                  4 * TB * Lp * Lp * 4 +      # per-head scores / probs (+ slack)
                  rows * D * 4)               # ctx scratch
    needed = 2 * (2 * act_bytes + per_layer_weight_bytes) + Lp * Lp * 4 + temp_bytes
    try:
        vmem_cap = pltpu.get_tpu_info().vmem_capacity_bytes   # 128 MiB v5e/v6e, 64 MiB v7x
    except Exception:
        vmem_cap = 64 << 20
    vmem_limit = int(min(needed + (16 << 20), vmem_cap - (12 << 20)))
    vmem_limit = max(vmem_limit, 32 << 20)

    flops = int(n_layers * (2 * B * Lp * D * (3 * D + D + 8 * D)   # qkv, out-proj, mlp
                            + 4 * B * Lp * Lp * D))               # head-split attn GEMMs
    transcendentals = int(n_layers * (B * H * Lp * Lp + B * Lp * 4 * D))
    bytes_accessed = int(weight_bytes * n_bt + 2 * B * Lp * D * 4)

    kernel = functools.partial(fused_layers_kernel, TB=TB, L=Lp, D=D, H=H)
    x2 = pl.pallas_call(
        kernel,
        out_shape=jax.ShapeDtypeStruct((B * Lp, D), jnp.float32),
        grid_spec=pltpu.PrefetchScalarGridSpec(
            num_scalar_prefetch=0,
            grid=(n_bt, n_layers),
            in_specs=in_specs,
            out_specs=out_spec,
            scratch_shapes=[pltpu.VMEM((rows, D), jnp.float32)],
        ),
        input_output_aliases={0: 0},
        compiler_params=pltpu.CompilerParams(
            dimension_semantics=("parallel", "arbitrary"),
            vmem_limit_bytes=vmem_limit),
        cost_estimate=pl.CostEstimate(flops=flops, transcendentals=transcendentals,
                                      bytes_accessed=bytes_accessed),
    )(x2, causal, *weights)

    # glue: EOT-token gather (CLIP convention: EOT = max token id in each sequence)
    # TODO(synk): a scalar-prefetch EOT path could avoid this full (B*Lp, D) round-trip.
    eot = jnp.argmax(text, axis=-1)
    x_eot = x2.reshape(B, Lp, D)[jnp.arange(B), eot]     # (B, D)

    vmem = pl.BlockSpec(memory_space=pltpu.MemorySpace.VMEM)
    out = pl.pallas_call(
        final_proj_kernel,
        out_shape=jax.ShapeDtypeStruct((B, params['text_proj'].shape[1]), jnp.float32),
        in_specs=[vmem] * 4,
        out_specs=vmem,
    )(x_eot, params['lnf_g'], params['lnf_b'], params['text_proj'])
    return out


def clip_text_encode_ref(text, params, *, n_heads):
    """Pure-JAX reference of the same pipeline (validation only)."""
    B, L = text.shape
    D = params['tok_emb'].shape[1]
    H = n_heads
    hd = D // H
    n_layers = params['w_qkv'].shape[0]
    x = (jnp.take(params['tok_emb'], text, axis=0) +
         params['pos_emb'][None]).astype(jnp.float32)
    idx = jnp.arange(L)
    causal = jnp.where(idx[None, :] <= idx[:, None], 0.0, NEG_INF).astype(jnp.float32)
    for l in range(n_layers):
        h1 = _layer_norm(x, params['ln1_g'][l], params['ln1_b'][l]).astype(jnp.bfloat16)
        qkv = jnp.einsum('ble,ef->blf', h1, params['w_qkv'][l],
                         preferred_element_type=jnp.float32) + params['b_qkv'][l]

        def split(t):
            return t.reshape(B, L, H, hd).transpose(0, 2, 1, 3).astype(jnp.bfloat16)

        q, k, v = split(qkv[..., :D]), split(qkv[..., D:2 * D]), split(qkv[..., 2 * D:])
        s = jnp.einsum('bhqd,bhkd->bhqk', q, k,
                       preferred_element_type=jnp.float32) / math.sqrt(hd) + causal
        p = jax.nn.softmax(s, axis=-1)
        ctx = jnp.einsum('bhqk,bhkd->bhqd', p.astype(jnp.bfloat16), v,
                         preferred_element_type=jnp.float32)
        ctx = ctx.transpose(0, 2, 1, 3).reshape(B, L, D)
        attn = jnp.einsum('ble,ef->blf', ctx.astype(jnp.bfloat16), params['wo'][l],
                          preferred_element_type=jnp.float32) + params['bo'][l]
        x = x + attn
        h2 = _layer_norm(x, params['ln2_g'][l], params['ln2_b'][l]).astype(jnp.bfloat16)
        fc = jnp.einsum('ble,ef->blf', h2, params['wfc'][l],
                        preferred_element_type=jnp.float32) + params['bfc'][l]
        fc = fc * jax.nn.sigmoid(1.702 * fc)
        mlp = jnp.einsum('ble,ef->blf', fc.astype(jnp.bfloat16), params['wpr'][l],
                         preferred_element_type=jnp.float32) + params['bpr'][l]
        x = x + mlp
    eot = jnp.argmax(text, axis=-1)
    x_eot = x[jnp.arange(B), eot]
    h = _layer_norm(x_eot, params['lnf_g'], params['lnf_b'])
    return jnp.dot(h.astype(jnp.bfloat16), params['text_proj'],
                   preferred_element_type=jnp.float32)


if __name__ == "__main__":
    # Small synthetic CLIP text config
    B, L, VOCAB, D, H, N_LAYERS = 2, 8, 64, 32, 4, 2

    key = jax.random.PRNGKey(0)
    k_params, k_text = jax.random.split(key)
    params = make_params(k_params, VOCAB, L, D, N_LAYERS)
    text = jax.random.randint(k_text, (B, L), 0, VOCAB, dtype=jnp.int32)

    encode = jax.jit(functools.partial(clip_text_encode, n_heads=H))
    out = jax.block_until_ready(encode(text, params))
    assert out.shape == (B, D) and out.dtype == jnp.float32

    # correctness check against the pure-JAX reference (approx softmax recip => loose tol)
    ref = jax.block_until_ready(
        jax.jit(functools.partial(clip_text_encode_ref, n_heads=H))(text, params))
    err = float(jnp.max(jnp.abs(out - ref)))
    assert err < 5e-2, f"kernel/reference mismatch: max abs err {err}"

    print("KERNEL_OK")
</pallas_src>

<mosaic_0001>
module attributes {stable_mosaic.version = 11 : i64} {
  func.func @final_proj_kernel(%arg0: memref<2x32xf32, #tpu.memory_space<vmem>>, %arg1: memref<1x32xf32, #tpu.memory_space<vmem>>, %arg2: memref<1x32xf32, #tpu.memory_space<vmem>>, %arg3: memref<32x32xbf16, #tpu.memory_space<vmem>>, %arg4: memref<2x32xf32, #tpu.memory_space<vmem>>) attributes {dimension_semantics = [], scalar_prefetch = 0 : i64, scratch_operands = 0 : i64, tpu.core_type = #tpu.core_type<tc>} {
    %c0 = arith.constant 0 : index
    %c0_0 = arith.constant 0 : index
    %0 = vector.load %arg0[%c0, %c0_0] : memref<2x32xf32, #tpu.memory_space<vmem>>, vector<2x32xf32>
    %c0_1 = arith.constant 0 : index
    %c0_2 = arith.constant 0 : index
    %1 = vector.load %arg1[%c0_1, %c0_2] : memref<1x32xf32, #tpu.memory_space<vmem>>, vector<1x32xf32>
    %c0_3 = arith.constant 0 : index
    %c0_4 = arith.constant 0 : index
    %2 = vector.load %arg2[%c0_3, %c0_4] : memref<1x32xf32, #tpu.memory_space<vmem>>, vector<1x32xf32>
    %cst = arith.constant dense<0.000000e+00> : vector<2xf32>
    %3 = vector.multi_reduction <add>, %0, %cst [1] : vector<2x32xf32> to vector<2xf32>
    %4 = vector.shape_cast %3 : vector<2xf32> to vector<2x1xf32>
    %cst_5 = arith.constant 3.200000e+01 : f32
    %5 = vector.broadcast %cst_5 : f32 to vector<2x1xf32>
    %6 = arith.divf %4, %5 : vector<2x1xf32>
    %7 = vector.broadcast %6 : vector<2x1xf32> to vector<2x32xf32>
    %8 = arith.subf %0, %7 : vector<2x32xf32>
    %9 = arith.mulf %8, %8 : vector<2x32xf32>
    %cst_6 = arith.constant dense<0.000000e+00> : vector<2xf32>
    %10 = vector.multi_reduction <add>, %9, %cst_6 [1] : vector<2x32xf32> to vector<2xf32>
    %11 = vector.shape_cast %10 : vector<2xf32> to vector<2x1xf32>
    %cst_7 = arith.constant 3.200000e+01 : f32
    %12 = vector.broadcast %cst_7 : f32 to vector<2x1xf32>
    %13 = arith.divf %11, %12 : vector<2x1xf32>
    %14 = vector.broadcast %6 : vector<2x1xf32> to vector<2x32xf32>
    %15 = arith.subf %0, %14 : vector<2x32xf32>
    %cst_8 = arith.constant 9.99999974E-6 : f32
    %16 = vector.broadcast %cst_8 : f32 to vector<2x1xf32>
    %17 = arith.addf %13, %16 : vector<2x1xf32>
    %18 = math.rsqrt %17 : vector<2x1xf32>
    %19 = vector.broadcast %18 : vector<2x1xf32> to vector<2x32xf32>
    %20 = arith.mulf %15, %19 : vector<2x32xf32>
    %21 = vector.broadcast %1 : vector<1x32xf32> to vector<2x32xf32>
    %22 = arith.mulf %20, %21 : vector<2x32xf32>
    %23 = vector.broadcast %2 : vector<1x32xf32> to vector<2x32xf32>
    %24 = arith.addf %22, %23 : vector<2x32xf32>
    %25 = arith.truncf %24 : vector<2x32xf32> to vector<2x32xbf16>
    %c0_9 = arith.constant 0 : index
    %c0_10 = arith.constant 0 : index
    %26 = vector.load %arg3[%c0_9, %c0_10] : memref<32x32xbf16, #tpu.memory_space<vmem>>, vector<32x32xbf16>
    %cst_11 = arith.constant dense<0.000000e+00> : vector<2x32xf32>
    %27 = tpu.matmul %25, %26, %cst_11 {dimension_numbers = #tpu.dot_dimension_numbers<[1], [0], [0], [1], [0, 0, 1, 1], [], []>} : vector<2x32xbf16>, vector<32x32xbf16>, vector<2x32xf32> -> vector<2x32xf32>
    %c0_12 = arith.constant 0 : index
    %c0_13 = arith.constant 0 : index
    %28 = vector.load %arg4[%c0_12, %c0_13] : memref<2x32xf32, #tpu.memory_space<vmem>>, vector<2x32xf32>
    tpu.vector_store %arg4[%c0_12, %c0_13], %27 {strides = array<i32>} : memref<2x32xf32, #tpu.memory_space<vmem>>, vector<2x32xf32>,
    return
  }
}

module attributes {stable_mosaic.version = 11 : i64} {
  func.func @fused_layers_kernel(%arg0: i32, %arg1: i32, %arg2: memref<8x32xf32, #tpu.memory_space<vmem>>, %arg3: memref<8x8xf32, #tpu.memory_space<vmem>>, %arg4: memref<1x1x32xf32, #tpu.memory_space<vmem>>, %arg5: memref<1x1x32xf32, #tpu.memory_space<vmem>>, %arg6: memref<1x32x96xbf16, #tpu.memory_space<vmem>>, %arg7: memref<1x1x96xf32, #tpu.memory_space<vmem>>, %arg8: memref<1x32x32xbf16, #tpu.memory_space<vmem>>, %arg9: memref<1x1x32xf32, #tpu.memory_space<vmem>>, %arg10: memref<1x1x32xf32, #tpu.memory_space<vmem>>, %arg11: memref<1x1x32xf32, #tpu.memory_space<vmem>>, %arg12: memref<1x32x128xbf16, #tpu.memory_space<vmem>>, %arg13: memref<1x1x128xf32, #tpu.memory_space<vmem>>, %arg14: memref<1x128x32xbf16, #tpu.memory_space<vmem>>, %arg15: memref<1x1x32xf32, #tpu.memory_space<vmem>>, %arg16: memref<8x32xf32, #tpu.memory_space<vmem>>, %arg17: memref<8x32xf32, #tpu.memory_space<vmem>>) attributes {dimension_semantics = [#tpu.dimension_semantics<parallel>, #tpu.dimension_semantics<arbitrary>], iteration_bounds = array<i64: 2, 2>, scalar_prefetch = 0 : i64, scratch_operands = 1 : i64, tpu.core_type = #tpu.core_type<tc>, window_params = [{transform_indices = @transform_0, window_bounds = array<i64: 8, 32>}, {pipeline_mode = #tpu.pipeline_mode<synchronous>, transform_indices = @transform_1, window_bounds = array<i64: 8, 8>}, {transform_indices = @transform_2, window_bounds = array<i64: 1, 1, 32>}, {transform_indices = @transform_3, window_bounds = array<i64: 1, 1, 32>}, {transform_indices = @transform_4, window_bounds = array<i64: 1, 32, 96>}, {transform_indices = @transform_5, window_bounds = array<i64: 1, 1, 96>}, {transform_indices = @transform_6, window_bounds = array<i64: 1, 32, 32>}, {transform_indices = @transform_7, window_bounds = array<i64: 1, 1, 32>}, {transform_indices = @transform_8, window_bounds = array<i64: 1, 1, 32>}, {transform_indices = @transform_9, window_bounds = array<i64: 1, 1, 32>}, {transform_indices = @transform_10, window_bounds = array<i64: 1, 32, 128>}, {transform_indices = @transform_11, window_bounds = array<i64: 1, 1, 128>}, {transform_indices = @transform_12, window_bounds = array<i64: 1, 128, 32>}, {transform_indices = @transform_13, window_bounds = array<i64: 1, 1, 32>}, {transform_indices = @transform_14, window_bounds = array<i64: 8, 32>}]} {
    %c0_i32 = arith.constant 0 : i32
    %0 = arith.cmpi eq, %arg1, %c0_i32 : i32
    %1 = arith.extui %0 : i1 to i32
    %c0_i32_0 = arith.constant 0 : i32
    %2 = arith.cmpi ne, %1, %c0_i32_0 : i32
    scf.if %2 {
      %c0_84 = arith.constant 0 : index
      %c0_85 = arith.constant 0 : index
      %213 = vector.load %arg2[%c0_84, %c0_85] : memref<8x32xf32, #tpu.memory_space<vmem>>, vector<8x32xf32>
      %c0_86 = arith.constant 0 : index
      %c0_87 = arith.constant 0 : index
      %214 = vector.load %arg16[%c0_86, %c0_87] : memref<8x32xf32, #tpu.memory_space<vmem>>, vector<8x32xf32>
      tpu.vector_store %arg16[%c0_86, %c0_87], %213 {strides = array<i32>} : memref<8x32xf32, #tpu.memory_space<vmem>>, vector<8x32xf32>,
    } else {
    }
    %c0 = arith.constant 0 : index
    %c0_1 = arith.constant 0 : index
    %3 = vector.load %arg16[%c0, %c0_1] : memref<8x32xf32, #tpu.memory_space<vmem>>, vector<8x32xf32>
    %c0_2 = arith.constant 0 : index
    %c0_3 = arith.constant 0 : index
    %c0_4 = arith.constant 0 : index
    %4 = vector.load %arg4[%c0_2, %c0_3, %c0_4] : memref<1x1x32xf32, #tpu.memory_space<vmem>>, vector<1x1x32xf32>
    %5 = vector.shape_cast %4 : vector<1x1x32xf32> to vector<1x32xf32>
    %c0_5 = arith.constant 0 : index
    %c0_6 = arith.constant 0 : index
    %c0_7 = arith.constant 0 : index
    %6 = vector.load %arg5[%c0_5, %c0_6, %c0_7] : memref<1x1x32xf32, #tpu.memory_space<vmem>>, vector<1x1x32xf32>
    %7 = vector.shape_cast %6 : vector<1x1x32xf32> to vector<1x32xf32>
    %cst = arith.constant dense<0.000000e+00> : vector<8xf32>
    %8 = vector.multi_reduction <add>, %3, %cst [1] : vector<8x32xf32> to vector<8xf32>
    %9 = vector.shape_cast %8 : vector<8xf32> to vector<8x1xf32>
    %cst_8 = arith.constant 3.200000e+01 : f32
    %10 = vector.broadcast %cst_8 : f32 to vector<8x1xf32>
    %11 = arith.divf %9, %10 : vector<8x1xf32>
    %12 = vector.broadcast %11 : vector<8x1xf32> to vector<8x32xf32>
    %13 = arith.subf %3, %12 : vector<8x32xf32>
    %14 = arith.mulf %13, %13 : vector<8x32xf32>
    %cst_9 = arith.constant dense<0.000000e+00> : vector<8xf32>
    %15 = vector.multi_reduction <add>, %14, %cst_9 [1] : vector<8x32xf32> to vector<8xf32>
    %16 = vector.shape_cast %15 : vector<8xf32> to vector<8x1xf32>
    %cst_10 = arith.constant 3.200000e+01 : f32
    %17 = vector.broadcast %cst_10 : f32 to vector<8x1xf32>
    %18 = arith.divf %16, %17 : vector<8x1xf32>
    %19 = vector.broadcast %11 : vector<8x1xf32> to vector<8x32xf32>
    %20 = arith.subf %3, %19 : vector<8x32xf32>
    %cst_11 = arith.constant 9.99999974E-6 : f32
    %21 = vector.broadcast %cst_11 : f32 to vector<8x1xf32>
    %22 = arith.addf %18, %21 : vector<8x1xf32>
    %23 = math.rsqrt %22 : vector<8x1xf32>
    %24 = vector.broadcast %23 : vector<8x1xf32> to vector<8x32xf32>
    %25 = arith.mulf %20, %24 : vector<8x32xf32>
    %26 = vector.broadcast %5 : vector<1x32xf32> to vector<8x32xf32>
    %27 = arith.mulf %25, %26 : vector<8x32xf32>
    %28 = vector.broadcast %7 : vector<1x32xf32> to vector<8x32xf32>
    %29 = arith.addf %27, %28 : vector<8x32xf32>
    %30 = arith.truncf %29 : vector<8x32xf32> to vector<8x32xbf16>
    %c0_12 = arith.constant 0 : index
    %c0_13 = arith.constant 0 : index
    %c0_14 = arith.constant 0 : index
    %31 = vector.load %arg6[%c0_12, %c0_13, %c0_14] : memref<1x32x96xbf16, #tpu.memory_space<vmem>>, vector<1x32x96xbf16>
    %32 = vector.shape_cast %31 : vector<1x32x96xbf16> to vector<32x96xbf16>
    %cst_15 = arith.constant dense<0.000000e+00> : vector<8x96xf32>
    %33 = tpu.matmul %30, %32, %cst_15 {dimension_numbers = #tpu.dot_dimension_numbers<[1], [0], [0], [1], [0, 0, 1, 1], [], []>} : vector<8x32xbf16>, vector<32x96xbf16>, vector<8x96xf32> -> vector<8x96xf32>
    %c0_16 = arith.constant 0 : index
    %c0_17 = arith.constant 0 : index
    %c0_18 = arith.constant 0 : index
    %34 = vector.load %arg7[%c0_16, %c0_17, %c0_18] : memref<1x1x96xf32, #tpu.memory_space<vmem>>, vector<1x1x96xf32>
    %35 = vector.shape_cast %34 : vector<1x1x96xf32> to vector<1x96xf32>
    %36 = vector.broadcast %35 : vector<1x96xf32> to vector<8x96xf32>
    %37 = arith.addf %33, %36 : vector<8x96xf32>
    %c0_19 = arith.constant 0 : index
    %c0_20 = arith.constant 0 : index
    %38 = vector.load %arg3[%c0_19, %c0_20] : memref<8x8xf32, #tpu.memory_space<vmem>>, vector<8x8xf32>
    %39 = vector.extract_strided_slice %37 {offsets = [0, 0], sizes = [8, 8], strides = [1, 1]} : vector<8x96xf32> to vector<8x8xf32>
    %40 = vector.shape_cast %39 : vector<8x8xf32> to vector<1x8x8xf32>
    %41 = arith.truncf %40 : vector<1x8x8xf32> to vector<1x8x8xbf16>
    %42 = vector.extract_strided_slice %37 {offsets = [0, 32], sizes = [8, 8], strides = [1, 1]} : vector<8x96xf32> to vector<8x8xf32>
    %43 = vector.shape_cast %42 : vector<8x8xf32> to vector<1x8x8xf32>
    %44 = arith.truncf %43 : vector<1x8x8xf32> to vector<1x8x8xbf16>
    %45 = vector.extract_strided_slice %37 {offsets = [0, 64], sizes = [8, 8], strides = [1, 1]} : vector<8x96xf32> to vector<8x8xf32>
    %46 = vector.shape_cast %45 : vector<8x8xf32> to vector<1x8x8xf32>
    %47 = arith.truncf %46 : vector<1x8x8xf32> to vector<1x8x8xbf16>
    "tpu.trace_start"() <{level = 10 : i32, message = "bqd,bkd->bqk"}> : () -> ()
    %cst_21 = arith.constant dense<0.000000e+00> : vector<1x8x8xf32>
    %48 = tpu.matmul %41, %44, %cst_21 {dimension_numbers = #tpu.dot_dimension_numbers<[2], [2], [1], [1], [0, 0, 0, 1, 1, 1], [0], [0]>} : vector<1x8x8xbf16>, vector<1x8x8xbf16>, vector<1x8x8xf32> -> vector<1x8x8xf32>
    "tpu.trace_stop"() : () -> ()
    %cst_22 = arith.constant 0.353553385 : f32
    %49 = vector.broadcast %cst_22 : f32 to vector<1x8x8xf32>
    %50 = arith.mulf %48, %49 : vector<1x8x8xf32>
    %51 = vector.shape_cast %38 : vector<8x8xf32> to vector<1x8x8xf32>
    %52 = arith.addf %50, %51 : vector<1x8x8xf32>
    %cst_23 = arith.constant dense<0xFF800000> : vector<1x8xf32>
    %53 = vector.multi_reduction <maximumf>, %52, %cst_23 [2] : vector<1x8x8xf32> to vector<1x8xf32>
    %54 = vector.shape_cast %53 : vector<1x8xf32> to vector<1x8x1xf32>
    %55 = vector.broadcast %54 : vector<1x8x1xf32> to vector<1x8x8xf32>
    %56 = arith.subf %52, %55 : vector<1x8x8xf32>
    %57 = math.exp %56 : vector<1x8x8xf32>
    %cst_24 = arith.constant dense<0.000000e+00> : vector<1x8xf32>
    %58 = vector.multi_reduction <add>, %57, %cst_24 [2] : vector<1x8x8xf32> to vector<1x8xf32>
    %59 = vector.shape_cast %58 : vector<1x8xf32> to vector<1x8x1xf32>
    %60 = tpu.reciprocal %59 {approx = true} : vector<1x8x1xf32> -> vector<1x8x1xf32>
    %61 = vector.broadcast %60 : vector<1x8x1xf32> to vector<1x8x8xf32>
    %62 = arith.mulf %57, %61 : vector<1x8x8xf32>
    %63 = arith.truncf %62 : vector<1x8x8xf32> to vector<1x8x8xbf16>
    "tpu.trace_start"() <{level = 10 : i32, message = "bqk,bkd->bqd"}> : () -> ()
    %cst_25 = arith.constant dense<0.000000e+00> : vector<1x8x8xf32>
    %64 = tpu.matmul %63, %47, %cst_25 {dimension_numbers = #tpu.dot_dimension_numbers<[2], [1], [1], [2], [0, 0, 0, 1, 1, 2], [0], [0]>} : vector<1x8x8xbf16>, vector<1x8x8xbf16>, vector<1x8x8xf32> -> vector<1x8x8xf32>
    "tpu.trace_stop"() : () -> ()
    %65 = vector.shape_cast %64 : vector<1x8x8xf32> to vector<8x8xf32>
    %c0_26 = arith.constant 0 : index
    %c0_27 = arith.constant 0 : index
    %66 = vector.load %arg17[%c0_26, %c0_27] : memref<8x32xf32, #tpu.memory_space<vmem>>, vector<8x8xf32>
    tpu.vector_store %arg17[%c0_26, %c0_27], %65 {strides = array<i32>} : memref<8x32xf32, #tpu.memory_space<vmem>>, vector<8x8xf32>,
    %67 = vector.extract_strided_slice %37 {offsets = [0, 8], sizes = [8, 8], strides = [1, 1]} : vector<8x96xf32> to vector<8x8xf32>
    %68 = vector.shape_cast %67 : vector<8x8xf32> to vector<1x8x8xf32>
    %69 = arith.truncf %68 : vector<1x8x8xf32> to vector<1x8x8xbf16>
    %70 = vector.extract_strided_slice %37 {offsets = [0, 40], sizes = [8, 8], strides = [1, 1]} : vector<8x96xf32> to vector<8x8xf32>
    %71 = vector.shape_cast %70 : vector<8x8xf32> to vector<1x8x8xf32>
    %72 = arith.truncf %71 : vector<1x8x8xf32> to vector<1x8x8xbf16>
    %73 = vector.extract_strided_slice %37 {offsets = [0, 72], sizes = [8, 8], strides = [1, 1]} : vector<8x96xf32> to vector<8x8xf32>
    %74 = vector.shape_cast %73 : vector<8x8xf32> to vector<1x8x8xf32>
    %75 = arith.truncf %74 : vector<1x8x8xf32> to vector<1x8x8xbf16>
    "tpu.trace_start"() <{level = 10 : i32, message = "bqd,bkd->bqk"}> : () -> ()
    %cst_28 = arith.constant dense<0.000000e+00> : vector<1x8x8xf32>
    %76 = tpu.matmul %69, %72, %cst_28 {dimension_numbers = #tpu.dot_dimension_numbers<[2], [2], [1], [1], [0, 0, 0, 1, 1, 1], [0], [0]>} : vector<1x8x8xbf16>, vector<1x8x8xbf16>, vector<1x8x8xf32> -> vector<1x8x8xf32>
    "tpu.trace_stop"() : () -> ()
    %cst_29 = arith.constant 0.353553385 : f32
    %77 = vector.broadcast %cst_29 : f32 to vector<1x8x8xf32>
    %78 = arith.mulf %76, %77 : vector<1x8x8xf32>
    %79 = vector.shape_cast %38 : vector<8x8xf32> to vector<1x8x8xf32>
    %80 = arith.addf %78, %79 : vector<1x8x8xf32>
    %cst_30 = arith.constant dense<0xFF800000> : vector<1x8xf32>
    %81 = vector.multi_reduction <maximumf>, %80, %cst_30 [2] : vector<1x8x8xf32> to vector<1x8xf32>
    %82 = vector.shape_cast %81 : vector<1x8xf32> to vector<1x8x1xf32>
    %83 = vector.broadcast %82 : vector<1x8x1xf32> to vector<1x8x8xf32>
    %84 = arith.subf %80, %83 : vector<1x8x8xf32>
    %85 = math.exp %84 : vector<1x8x8xf32>
    %cst_31 = arith.constant dense<0.000000e+00> : vector<1x8xf32>
    %86 = vector.multi_reduction <add>, %85, %cst_31 [2] : vector<1x8x8xf32> to vector<1x8xf32>
    %87 = vector.shape_cast %86 : vector<1x8xf32> to vector<1x8x1xf32>
    %88 = tpu.reciprocal %87 {approx = true} : vector<1x8x1xf32> -> vector<1x8x1xf32>
    %89 = vector.broadcast %88 : vector<1x8x1xf32> to vector<1x8x8xf32>
    %90 = arith.mulf %85, %89 : vector<1x8x8xf32>
    %91 = arith.truncf %90 : vector<1x8x8xf32> to vector<1x8x8xbf16>
    "tpu.trace_start"() <{level = 10 : i32, message = "bqk,bkd->bqd"}> : () -> ()
    %cst_32 = arith.constant dense<0.000000e+00> : vector<1x8x8xf32>
    %92 = tpu.matmul %91, %75, %cst_32 {dimension_numbers = #tpu.dot_dimension_numbers<[2], [1], [1], [2], [0, 0, 0, 1, 1, 2], [0], [0]>} : vector<1x8x8xbf16>, vector<1x8x8xbf16>, vector<1x8x8xf32> -> vector<1x8x8xf32>
    "tpu.trace_stop"() : () -> ()
    %93 = vector.shape_cast %92 : vector<1x8x8xf32> to vector<8x8xf32>
    %c0_33 = arith.constant 0 : index
    %c8 = arith.constant 8 : index
    %94 = vector.load %arg17[%c0_33, %c8] : memref<8x32xf32, #tpu.memory_space<vmem>>, vector<8x8xf32>
    tpu.vector_store %arg17[%c0_33, %c8], %93 {strides = array<i32>} : memref<8x32xf32, #tpu.memory_space<vmem>>, vector<8x8xf32>,
    %95 = vector.extract_strided_slice %37 {offsets = [0, 16], sizes = [8, 8], strides = [1, 1]} : vector<8x96xf32> to vector<8x8xf32>
    %96 = vector.shape_cast %95 : vector<8x8xf32> to vector<1x8x8xf32>
    %97 = arith.truncf %96 : vector<1x8x8xf32> to vector<1x8x8xbf16>
    %98 = vector.extract_strided_slice %37 {offsets = [0, 48], sizes = [8, 8], strides = [1, 1]} : vector<8x96xf32> to vector<8x8xf32>
    %99 = vector.shape_cast %98 : vector<8x8xf32> to vector<1x8x8xf32>
    %100 = arith.truncf %99 : vector<1x8x8xf32> to vector<1x8x8xbf16>
    %101 = vector.extract_strided_slice %37 {offsets = [0, 80], sizes = [8, 8], strides = [1, 1]} : vector<8x96xf32> to vector<8x8xf32>
    %102 = vector.shape_cast %101 : vector<8x8xf32> to vector<1x8x8xf32>
    %103 = arith.truncf %102 : vector<1x8x8xf32> to vector<1x8x8xbf16>
    "tpu.trace_start"() <{level = 10 : i32, message = "bqd,bkd->bqk"}> : () -> ()
    %cst_34 = arith.constant dense<0.000000e+00> : vector<1x8x8xf32>
    %104 = tpu.matmul %97, %100, %cst_34 {dimension_numbers = #tpu.dot_dimension_numbers<[2], [2], [1], [1], [0, 0, 0, 1, 1, 1], [0], [0]>} : vector<1x8x8xbf16>, vector<1x8x8xbf16>, vector<1x8x8xf32> -> vector<1x8x8xf32>
    "tpu.trace_stop"() : () -> ()
    %cst_35 = arith.constant 0.353553385 : f32
    %105 = vector.broadcast %cst_35 : f32 to vector<1x8x8xf32>
    %106 = arith.mulf %104, %105 : vector<1x8x8xf32>
    %107 = vector.shape_cast %38 : vector<8x8xf32> to vector<1x8x8xf32>
    %108 = arith.addf %106, %107 : vector<1x8x8xf32>
    %cst_36 = arith.constant dense<0xFF800000> : vector<1x8xf32>
    %109 = vector.multi_reduction <maximumf>, %108, %cst_36 [2] : vector<1x8x8xf32> to vector<1x8xf32>
    %110 = vector.shape_cast %109 : vector<1x8xf32> to vector<1x8x1xf32>
    %111 = vector.broadcast %110 : vector<1x8x1xf32> to vector<1x8x8xf32>
    %112 = arith.subf %108, %111 : vector<1x8x8xf32>
    %113 = math.exp %112 : vector<1x8x8xf32>
    %cst_37 = arith.constant dense<0.000000e+00> : vector<1x8xf32>
    %114 = vector.multi_reduction <add>, %113, %cst_37 [2] : vector<1x8x8xf32> to vector<1x8xf32>
    %115 = vector.shape_cast %114 : vector<1x8xf32> to vector<1x8x1xf32>
    %116 = tpu.reciprocal %115 {approx = true} : vector<1x8x1xf32> -> vector<1x8x1xf32>
    %117 = vector.broadcast %116 : vector<1x8x1xf32> to vector<1x8x8xf32>
    %118 = arith.mulf %113, %117 : vector<1x8x8xf32>
    %119 = arith.truncf %118 : vector<1x8x8xf32> to vector<1x8x8xbf16>
    "tpu.trace_start"() <{level = 10 : i32, message = "bqk,bkd->bqd"}> : () -> ()
    %cst_38 = arith.constant dense<0.000000e+00> : vector<1x8x8xf32>
    %120 = tpu.matmul %119, %103, %cst_38 {dimension_numbers = #tpu.dot_dimension_numbers<[2], [1], [1], [2], [0, 0, 0, 1, 1, 2], [0], [0]>} : vector<1x8x8xbf16>, vector<1x8x8xbf16>, vector<1x8x8xf32> -> vector<1x8x8xf32>
    "tpu.trace_stop"() : () -> ()
    %121 = vector.shape_cast %120 : vector<1x8x8xf32> to vector<8x8xf32>
    %c0_39 = arith.constant 0 : index
    %c16 = arith.constant 16 : index
    %122 = vector.load %arg17[%c0_39, %c16] : memref<8x32xf32, #tpu.memory_space<vmem>>, vector<8x8xf32>
    tpu.vector_store %arg17[%c0_39, %c16], %121 {strides = array<i32>} : memref<8x32xf32, #tpu.memory_space<vmem>>, vector<8x8xf32>,
    %123 = vector.extract_strided_slice %37 {offsets = [0, 24], sizes = [8, 8], strides = [1, 1]} : vector<8x96xf32> to vector<8x8xf32>
    %124 = vector.shape_cast %123 : vector<8x8xf32> to vector<1x8x8xf32>
    %125 = arith.truncf %124 : vector<1x8x8xf32> to vector<1x8x8xbf16>
    %126 = vector.extract_strided_slice %37 {offsets = [0, 56], sizes = [8, 8], strides = [1, 1]} : vector<8x96xf32> to vector<8x8xf32>
    %127 = vector.shape_cast %126 : vector<8x8xf32> to vector<1x8x8xf32>
    %128 = arith.truncf %127 : vector<1x8x8xf32> to vector<1x8x8xbf16>
    %129 = vector.extract_strided_slice %37 {offsets = [0, 88], sizes = [8, 8], strides = [1, 1]} : vector<8x96xf32> to vector<8x8xf32>
    %130 = vector.shape_cast %129 : vector<8x8xf32> to vector<1x8x8xf32>
    %131 = arith.truncf %130 : vector<1x8x8xf32> to vector<1x8x8xbf16>
    "tpu.trace_start"() <{level = 10 : i32, message = "bqd,bkd->bqk"}> : () -> ()
    %cst_40 = arith.constant dense<0.000000e+00> : vector<1x8x8xf32>
    %132 = tpu.matmul %125, %128, %cst_40 {dimension_numbers = #tpu.dot_dimension_numbers<[2], [2], [1], [1], [0, 0, 0, 1, 1, 1], [0], [0]>} : vector<1x8x8xbf16>, vector<1x8x8xbf16>, vector<1x8x8xf32> -> vector<1x8x8xf32>
    "tpu.trace_stop"() : () -> ()
    %cst_41 = arith.constant 0.353553385 : f32
    %133 = vector.broadcast %cst_41 : f32 to vector<1x8x8xf32>
    %134 = arith.mulf %132, %133 : vector<1x8x8xf32>
    %135 = vector.shape_cast %38 : vector<8x8xf32> to vector<1x8x8xf32>
    %136 = arith.addf %134, %135 : vector<1x8x8xf32>
    %cst_42 = arith.constant dense<0xFF800000> : vector<1x8xf32>
    %137 = vector.multi_reduction <maximumf>, %136, %cst_42 [2] : vector<1x8x8xf32> to vector<1x8xf32>
    %138 = vector.shape_cast %137 : vector<1x8xf32> to vector<1x8x1xf32>
    %139 = vector.broadcast %138 : vector<1x8x1xf32> to vector<1x8x8xf32>
    %140 = arith.subf %136, %139 : vector<1x8x8xf32>
    %141 = math.exp %140 : vector<1x8x8xf32>
    %cst_43 = arith.constant dense<0.000000e+00> : vector<1x8xf32>
    %142 = vector.multi_reduction <add>, %141, %cst_43 [2] : vector<1x8x8xf32> to vector<1x8xf32>
    %143 = vector.shape_cast %142 : vector<1x8xf32> to vector<1x8x1xf32>
    %144 = tpu.reciprocal %143 {approx = true} : vector<1x8x1xf32> -> vector<1x8x1xf32>
    %145 = vector.broadcast %144 : vector<1x8x1xf32> to vector<1x8x8xf32>
    %146 = arith.mulf %141, %145 : vector<1x8x8xf32>
    %147 = arith.truncf %146 : vector<1x8x8xf32> to vector<1x8x8xbf16>
    "tpu.trace_start"() <{level = 10 : i32, message = "bqk,bkd->bqd"}> : () -> ()
    %cst_44 = arith.constant dense<0.000000e+00> : vector<1x8x8xf32>
    %148 = tpu.matmul %147, %131, %cst_44 {dimension_numbers = #tpu.dot_dimension_numbers<[2], [1], [1], [2], [0, 0, 0, 1, 1, 2], [0], [0]>} : vector<1x8x8xbf16>, vector<1x8x8xbf16>, vector<1x8x8xf32> -> vector<1x8x8xf32>
    "tpu.trace_stop"() : () -> ()
    %149 = vector.shape_cast %148 : vector<1x8x8xf32> to vector<8x8xf32>
    %c0_45 = arith.constant 0 : index
    %c24 = arith.constant 24 : index
    %150 = vector.load %arg17[%c0_45, %c24] : memref<8x32xf32, #tpu.memory_space<vmem>>, vector<8x8xf32>
    tpu.vector_store %arg17[%c0_45, %c24], %149 {strides = array<i32>} : memref<8x32xf32, #tpu.memory_space<vmem>>, vector<8x8xf32>,
    %c0_46 = arith.constant 0 : index
    %c0_47 = arith.constant 0 : index
    %151 = vector.load %arg17[%c0_46, %c0_47] : memref<8x32xf32, #tpu.memory_space<vmem>>, vector<8x32xf32>
    %152 = arith.truncf %151 : vector<8x32xf32> to vector<8x32xbf16>
    %c0_48 = arith.constant 0 : index
    %c0_49 = arith.constant 0 : index
    %c0_50 = arith.constant 0 : index
    %153 = vector.load %arg8[%c0_48, %c0_49, %c0_50] : memref<1x32x32xbf16, #tpu.memory_space<vmem>>, vector<1x32x32xbf16>
    %154 = vector.shape_cast %153 : vector<1x32x32xbf16> to vector<32x32xbf16>
    %cst_51 = arith.constant dense<0.000000e+00> : vector<8x32xf32>
    %155 = tpu.matmul %152, %154, %cst_51 {dimension_numbers = #tpu.dot_dimension_numbers<[1], [0], [0], [1], [0, 0, 1, 1], [], []>} : vector<8x32xbf16>, vector<32x32xbf16>, vector<8x32xf32> -> vector<8x32xf32>
    %c0_52 = arith.constant 0 : index
    %c0_53 = arith.constant 0 : index
    %c0_54 = arith.constant 0 : index
    %156 = vector.load %arg9[%c0_52, %c0_53, %c0_54] : memref<1x1x32xf32, #tpu.memory_space<vmem>>, vector<1x1x32xf32>
    %157 = vector.shape_cast %156 : vector<1x1x32xf32> to vector<1x32xf32>
    %158 = vector.broadcast %157 : vector<1x32xf32> to vector<8x32xf32>
    %159 = arith.addf %155, %158 : vector<8x32xf32>
    %160 = arith.addf %3, %159 : vector<8x32xf32>
    %c0_55 = arith.constant 0 : index
    %c0_56 = arith.constant 0 : index
    %c0_57 = arith.constant 0 : index
    %161 = vector.load %arg10[%c0_55, %c0_56, %c0_57] : memref<1x1x32xf32, #tpu.memory_space<vmem>>, vector<1x1x32xf32>
    %162 = vector.shape_cast %161 : vector<1x1x32xf32> to vector<1x32xf32>
    %c0_58 = arith.constant 0 : index
    %c0_59 = arith.constant 0 : index
    %c0_60 = arith.constant 0 : index
    %163 = vector.load %arg11[%c0_58, %c0_59, %c0_60] : memref<1x1x32xf32, #tpu.memory_space<vmem>>, vector<1x1x32xf32>
    %164 = vector.shape_cast %163 : vector<1x1x32xf32> to vector<1x32xf32>
    %cst_61 = arith.constant dense<0.000000e+00> : vector<8xf32>
    %165 = vector.multi_reduction <add>, %160, %cst_61 [1] : vector<8x32xf32> to vector<8xf32>
    %166 = vector.shape_cast %165 : vector<8xf32> to vector<8x1xf32>
    %cst_62 = arith.constant 3.200000e+01 : f32
    %167 = vector.broadcast %cst_62 : f32 to vector<8x1xf32>
    %168 = arith.divf %166, %167 : vector<8x1xf32>
    %169 = vector.broadcast %168 : vector<8x1xf32> to vector<8x32xf32>
    %170 = arith.subf %160, %169 : vector<8x32xf32>
    %171 = arith.mulf %170, %170 : vector<8x32xf32>
    %cst_63 = arith.constant dense<0.000000e+00> : vector<8xf32>
    %172 = vector.multi_reduction <add>, %171, %cst_63 [1] : vector<8x32xf32> to vector<8xf32>
    %173 = vector.shape_cast %172 : vector<8xf32> to vector<8x1xf32>
    %cst_64 = arith.constant 3.200000e+01 : f32
    %174 = vector.broadcast %cst_64 : f32 to vector<8x1xf32>
    %175 = arith.divf %173, %174 : vector<8x1xf32>
    %176 = vector.broadcast %168 : vector<8x1xf32> to vector<8x32xf32>
    %177 = arith.subf %160, %176 : vector<8x32xf32>
    %cst_65 = arith.constant 9.99999974E-6 : f32
    %178 = vector.broadcast %cst_65 : f32 to vector<8x1xf32>
    %179 = arith.addf %175, %178 : vector<8x1xf32>
    %180 = math.rsqrt %179 : vector<8x1xf32>
    %181 = vector.broadcast %180 : vector<8x1xf32> to vector<8x32xf32>
    %182 = arith.mulf %177, %181 : vector<8x32xf32>
    %183 = vector.broadcast %162 : vector<1x32xf32> to vector<8x32xf32>
    %184 = arith.mulf %182, %183 : vector<8x32xf32>
    %185 = vector.broadcast %164 : vector<1x32xf32> to vector<8x32xf32>
    %186 = arith.addf %184, %185 : vector<8x32xf32>
    %187 = arith.truncf %186 : vector<8x32xf32> to vector<8x32xbf16>
    %c0_66 = arith.constant 0 : index
    %c0_67 = arith.constant 0 : index
    %c0_68 = arith.constant 0 : index
    %188 = vector.load %arg12[%c0_66, %c0_67, %c0_68] : memref<1x32x128xbf16, #tpu.memory_space<vmem>>, vector<1x32x128xbf16>
    %189 = vector.shape_cast %188 : vector<1x32x128xbf16> to vector<32x128xbf16>
    %cst_69 = arith.constant dense<0.000000e+00> : vector<8x128xf32>
    %190 = tpu.matmul %187, %189, %cst_69 {dimension_numbers = #tpu.dot_dimension_numbers<[1], [0], [0], [1], [0, 0, 1, 1], [], []>} : vector<8x32xbf16>, vector<32x128xbf16>, vector<8x128xf32> -> vector<8x128xf32>
    %c0_70 = arith.constant 0 : index
    %c0_71 = arith.constant 0 : index
    %c0_72 = arith.constant 0 : index
    %191 = vector.load %arg13[%c0_70, %c0_71, %c0_72] : memref<1x1x128xf32, #tpu.memory_space<vmem>>, vector<1x1x128xf32>
    %192 = vector.shape_cast %191 : vector<1x1x128xf32> to vector<1x128xf32>
    %193 = vector.broadcast %192 : vector<1x128xf32> to vector<8x128xf32>
    %194 = arith.addf %190, %193 : vector<8x128xf32>
    %cst_73 = arith.constant 1.702000e+00 : f32
    %195 = vector.broadcast %cst_73 : f32 to vector<8x128xf32>
    %196 = arith.mulf %195, %194 : vector<8x128xf32>
    %197 = arith.negf %196 : vector<8x128xf32>
    %198 = math.exp %197 : vector<8x128xf32>
    %cst_74 = arith.constant 1.000000e+00 : f32
    %199 = vector.broadcast %cst_74 : f32 to vector<8x128xf32>
    %200 = arith.addf %199, %198 : vector<8x128xf32>
    %201 = arith.divf %199, %200 : vector<8x128xf32>
    %202 = arith.mulf %194, %201 : vector<8x128xf32>
    %203 = arith.truncf %202 : vector<8x128xf32> to vector<8x128xbf16>
    %c0_75 = arith.constant 0 : index
    %c0_76 = arith.constant 0 : index
    %c0_77 = arith.constant 0 : index
    %204 = vector.load %arg14[%c0_75, %c0_76, %c0_77] : memref<1x128x32xbf16, #tpu.memory_space<vmem>>, vector<1x128x32xbf16>
    %205 = vector.shape_cast %204 : vector<1x128x32xbf16> to vector<128x32xbf16>
    %cst_78 = arith.constant dense<0.000000e+00> : vector<8x32xf32>
    %206 = tpu.matmul %203, %205, %cst_78 {dimension_numbers = #tpu.dot_dimension_numbers<[1], [0], [0], [1], [0, 0, 1, 1], [], []>} : vector<8x128xbf16>, vector<128x32xbf16>, vector<8x32xf32> -> vector<8x32xf32>
    %c0_79 = arith.constant 0 : index
    %c0_80 = arith.constant 0 : index
    %c0_81 = arith.constant 0 : index
    %207 = vector.load %arg15[%c0_79, %c0_80, %c0_81] : memref<1x1x32xf32, #tpu.memory_space<vmem>>, vector<1x1x32xf32>
    %208 = vector.shape_cast %207 : vector<1x1x32xf32> to vector<1x32xf32>
    %209 = vector.broadcast %208 : vector<1x32xf32> to vector<8x32xf32>
    %210 = arith.addf %206, %209 : vector<8x32xf32>
    %211 = arith.addf %160, %210 : vector<8x32xf32>
    %c0_82 = arith.constant 0 : index
    %c0_83 = arith.constant 0 : index
    %212 = vector.load %arg16[%c0_82, %c0_83] : memref<8x32xf32, #tpu.memory_space<vmem>>, vector<8x32xf32>
    tpu.vector_store %arg16[%c0_82, %c0_83], %211 {strides = array<i32>} : memref<8x32xf32, #tpu.memory_space<vmem>>, vector<8x32xf32>,
    return
  }
  func.func @transform_0(%arg0: i32, %arg1: i32) -> (i32, i32) {
    %c0_i32 = arith.constant 0 : i32
    %c0_i32_0 = arith.constant 0 : i32
    return %arg0, %c0_i32 : i32, i32
  }
  func.func @transform_1(%arg0: i32, %arg1: i32) -> (i32, i32) {
    %c0_i32 = arith.constant 0 : i32
    %c0_i32_0 = arith.constant 0 : i32
    %c0_i32_1 = arith.constant 0 : i32
    return %c0_i32, %c0_i32_0 : i32, i32
  }
  func.func @transform_2(%arg0: i32, %arg1: i32) -> (i32, i32, i32) {
    %c0_i32 = arith.constant 0 : i32
    %c0_i32_0 = arith.constant 0 : i32
    %c0_i32_1 = arith.constant 0 : i32
    return %arg1, %c0_i32, %c0_i32_0 : i32, i32, i32
  }
  func.func @transform_3(%arg0: i32, %arg1: i32) -> (i32, i32, i32) {
    %c0_i32 = arith.constant 0 : i32
    %c0_i32_0 = arith.constant 0 : i32
    %c0_i32_1 = arith.constant 0 : i32
    return %arg1, %c0_i32, %c0_i32_0 : i32, i32, i32
  }
  func.func @transform_4(%arg0: i32, %arg1: i32) -> (i32, i32, i32) {
    %c0_i32 = arith.constant 0 : i32
    %c0_i32_0 = arith.constant 0 : i32
    %c0_i32_1 = arith.constant 0 : i32
    return %arg1, %c0_i32, %c0_i32_0 : i32, i32, i32
  }
  func.func @transform_5(%arg0: i32, %arg1: i32) -> (i32, i32, i32) {
    %c0_i32 = arith.constant 0 : i32
    %c0_i32_0 = arith.constant 0 : i32
    %c0_i32_1 = arith.constant 0 : i32
    return %arg1, %c0_i32, %c0_i32_0 : i32, i32, i32
  }
  func.func @transform_6(%arg0: i32, %arg1: i32) -> (i32, i32, i32) {
    %c0_i32 = arith.constant 0 : i32
    %c0_i32_0 = arith.constant 0 : i32
    %c0_i32_1 = arith.constant 0 : i32
    return %arg1, %c0_i32, %c0_i32_0 : i32, i32, i32
  }
  func.func @transform_7(%arg0: i32, %arg1: i32) -> (i32, i32, i32) {
    %c0_i32 = arith.constant 0 : i32
    %c0_i32_0 = arith.constant 0 : i32
    %c0_i32_1 = arith.constant 0 : i32
    return %arg1, %c0_i32, %c0_i32_0 : i32, i32, i32
  }
  func.func @transform_8(%arg0: i32, %arg1: i32) -> (i32, i32, i32) {
    %c0_i32 = arith.constant 0 : i32
    %c0_i32_0 = arith.constant 0 : i32
    %c0_i32_1 = arith.constant 0 : i32
    return %arg1, %c0_i32, %c0_i32_0 : i32, i32, i32
  }
  func.func @transform_9(%arg0: i32, %arg1: i32) -> (i32, i32, i32) {
    %c0_i32 = arith.constant 0 : i32
    %c0_i32_0 = arith.constant 0 : i32
    %c0_i32_1 = arith.constant 0 : i32
    return %arg1, %c0_i32, %c0_i32_0 : i32, i32, i32
  }
  func.func @transform_10(%arg0: i32, %arg1: i32) -> (i32, i32, i32) {
    %c0_i32 = arith.constant 0 : i32
    %c0_i32_0 = arith.constant 0 : i32
    %c0_i32_1 = arith.constant 0 : i32
    return %arg1, %c0_i32, %c0_i32_0 : i32, i32, i32
  }
  func.func @transform_11(%arg0: i32, %arg1: i32) -> (i32, i32, i32) {
    %c0_i32 = arith.constant 0 : i32
    %c0_i32_0 = arith.constant 0 : i32
    %c0_i32_1 = arith.constant 0 : i32
    return %arg1, %c0_i32, %c0_i32_0 : i32, i32, i32
  }
  func.func @transform_12(%arg0: i32, %arg1: i32) -> (i32, i32, i32) {
    %c0_i32 = arith.constant 0 : i32
    %c0_i32_0 = arith.constant 0 : i32
    %c0_i32_1 = arith.constant 0 : i32
    return %arg1, %c0_i32, %c0_i32_0 : i32, i32, i32
  }
  func.func @transform_13(%arg0: i32, %arg1: i32) -> (i32, i32, i32) {
    %c0_i32 = arith.constant 0 : i32
    %c0_i32_0 = arith.constant 0 : i32
    %c0_i32_1 = arith.constant 0 : i32
    return %arg1, %c0_i32, %c0_i32_0 : i32, i32, i32
  }
  func.func @transform_14(%arg0: i32, %arg1: i32) -> (i32, i32) {
    %c0_i32 = arith.constant 0 : i32
    %c0_i32_0 = arith.constant 0 : i32
    return %arg0, %c0_i32 : i32, i32
  }
}

</mosaic_0001>

<bundles_post_ra>
// kernel: clip_text_encode.3
= control target key start
LH: loop header
LB: loop body
LE: loop exit
PB: predicated region body
PF: predicated region fallthrough
CT: control target
= control target key end

     0   :  { %vm22_vm0 = vcmask 254976   ;;  %s232_s0 = inlined_call_operand.vmem [shape: f32[2,32], index: 0, kind: input, shape index: {}]   ;;  %s233_s1 = inlined_call_operand.vmem [shape: f32[1,32], index: 1, kind: input, shape index: {}]   ;;  %s234_s2 = inlined_call_operand.vmem [shape: f32[1,32], index: 2, kind: input, shape index: {}]   ;;  %s235_s3 = inlined_call_operand.vmem [shape: bf16[32,32], index: 3, kind: input, shape index: {}]   ;;  %s236_s4 = inlined_call_operand.hbm [shape: f32[2,32], index: 4, kind: output, shape index: {}]  }
   0x1   :  { %v19_v0 = vld [vmem:[%s232_s0] sm:$0x3] }
   0x2   :  { %v23_v1 = vsel %vm22_vm0, %v19_v0, 0.0 }
   0x3   :  { %24 = vadd.xlane.f32.xlu0 %v23_v1 }
   0x4   :  { %9 = vsyncpa [#allocation3], 0  ;;  %v146_v7 = vld [vmem:[%s235_s3] sm:$0xff]   ;;  %v174_v8 = vmov 0.0   ;;  %v147_v9 = vld [vmem:[%s235_s3 + $0x8] sm:$0xff]   ;;  %vm175_vm1 = vmmov 0  }
   0x5   :  { %135 = vmatprep.subr.bf16.mxu0 %v174_v8  ;;  %139 = vmatprep.mubr.msk.bf16.mxu0 %vm175_vm1, %v174_v8  ;;  %v127_v14 = vld [vmem:[%s233_s1] ss:$0 sm:$0xff]  ;;  %vm68_vm2 = vcmask 261120   ;;  %s176_s3 = smov [#allocation2]  }
   0x6   :  { %136 = vmatpush3.bf16.msra.mxu0 %v146_v7  ;;  %v128_v16 = vld [vmem:[%s234_s2] ss:$0 sm:$0xff]  ;;  %s119_s24 = sshll.u32 %s176_s3, 4  ;;  %s120_s24 = int_to_ptr.vmem [resolvable:$true] %s119_s24 }
   0x7   :  { %137 = vmatprep.subr.bf16.mxu0 %v174_v8  ;;  %s150_s25 = scalar_lea.vmem %s120_s24, 32  ;;  %p155_p1 = scmp.lt.s32.totalorder %s120_s24, %s120_s24 }
   0x8   :  { %p151_p0 = scmp.ne.s32.totalorder %s120_s24, %s150_s25  ;;  %p156_p2 = scmp.lt.s32.totalorder %s150_s25, %s150_s25 }
   0xa   :  { %138 = vmatpush3.bf16.msra.mxu0 %v147_v9  ;;  %p157_p3 = por %p156_p2, %p155_p1 }
   0xc   :  { %p158_p4 = pnand %p157_p3, %p151_p0 }
  0x90   :  { %v25_v2 = vpop.xlane.xlu0 %24 }
  0x91   :  { %v27_v3 = vmul.f32 0.03125, %v25_v2 }
  0x93   :  { %v28_v4 = vsub.f32 %v19_v0, %v27_v3 }
  0x95   :  { %v29_v5 = vmul.f32 %v28_v4, %v28_v4 }
  0x97   :  { %v30_v6 = vsel %vm22_vm0, %v29_v5, 0.0 }
  0x98   :  { %31 = vadd.xlane.f32.xlu0 %v30_v6 }
 0x125   :  { %v32_v10 = vpop.xlane.xlu0 %31 }
 0x126   :  { %v33_v11 = vmul.f32 0.03125, %v32_v10 }
 0x128   :  { %v34_v12 = vadd.f32 1e-05, %v33_v11 }
 0x12a   :  { %148 = vrsqrt.f32 %v34_v12 }
 0x134   :  { %v149_v13 = vpop.eup %148 }
 0x135   :  { %v36_v15 = vmul.f32 %v149_v13, %v28_v4 }
 0x137   :  { %v43_v17 = vmul.f32 %v127_v14, %v36_v15 }
 0x139   :  { %v50_v18 = vadd.f32 %v128_v16, %v43_v17 }
 0x13b   :  { %v51_v19 = vpack.c.bf16 %v50_v18, %v50_v18 }
 0x13d   :  { %140 = vmatmul.mubr.msk.bf16.vlgmr.msra.gmra.mrb[0].mxu0 %vm68_vm2, %v51_v19 }
 0x210   :  { %v106_v20 = vpop.f32.mrb[0].mxu0 }
 0x211   :  { %112 = vst.msk [vmem:[#allocation2] sm:$0x3] %vm22_vm0, %v106_v20  ;;  %v141_v21 = vpop.f32.mrb[1].mxu0 }
 0x212   :  { %v109_v22 = vpop.f32.mrb[2].mxu0 }
 0x213   :  { %161 = shalt.err (!%p158_p4)
}
 0x214   :  { %s162_s26 = scalar_lea.hbm %s236_s4, 32 }
 0x215   :  { %p163_p5 = scmp.ne.s32.totalorder %s236_s4, %s162_s26  ;;  %p166_p6 = scmp.lt.u32.totalorder %s162_s26, %s236_s4 }
 0x217   :  { %p168_p7 = pnand %p166_p6, %p163_p5 }
 0x219   :  { %171 = shalt.err (!%p168_p7)
}
 0x21a   :  { %122 = dma.vmem_to_hbm [thread:$0]  %s120_s24, 32, %s236_s4, [#allocation3]   ;;  %v142_v23 = vpop.f32.mrb[3].mxu0 }
 0x21b   :  { %172 = dma.done.wait [#allocation3], 32  }
 0x21c   :  { %173 = vsyncadd [#allocation3], 4294967264 }
 0x21d   :  { %126 = vsyncpa [#allocation3], 1 }

// kernel: clip_text_encode.2
= control target key start
LH: loop header
LB: loop body
LE: loop exit
PB: predicated region body
PF: predicated region fallthrough
CT: control target
= control target key end

     0   :  { %s2122_s29 = smov 0   ;;  %s2124_s30 = smov 0   ;;  %s2399_s0 = inlined_call_operand.vmem [shape: f32[16,32], index: 0, kind: input, shape index: {}, may-alias: {0,14}]   ;;  %s2400_s1 = inlined_call_operand.vmem [shape: f32[8,8], index: 1, kind: input, shape index: {}]   ;;  %s2401_s2 = inlined_call_operand.vmem [shape: f32[2,1,32], index: 2, kind: input, shape index: {}]   ;;  %s2402_s3 = inlined_call_operand.vmem [shape: f32[2,1,32], index: 3, kind: input, shape index: {}]   ;;  %s2403_s4 = inlined_call_operand.vmem [shape: bf16[2,32,96], index: 4, kind: input, shape index: {}]   ;;  %s2404_s5 = inlined_call_operand.vmem [shape: f32[2,1,96], index: 5, kind: input, shape index: {}]   ;;  %s2405_s6 = inlined_call_operand.vmem [shape: bf16[2,32,32], index: 6, kind: input, shape index: {}]   ;;  %s2406_s7 = inlined_call_operand.vmem [shape: f32[2,1,32], index: 7, kind: input, shape index: {}]   ;;  %s2407_s8 = inlined_call_operand.vmem [shape: f32[2,1,32], index: 8, kind: input, shape index: {}]   ;;  %s2408_s9 = inlined_call_operand.vmem [shape: f32[2,1,32], index: 9, kind: input, shape index: {}]   ;;  %s2409_s10 = inlined_call_operand.vmem [shape: bf16[2,32,128], index: 10, kind: input, shape index: {}]   ;;  %s2410_s11 = inlined_call_operand.vmem [shape: f32[2,1,128], index: 11, kind: input, shape index: {}]   ;;  %s2411_s12 = inlined_call_operand.vmem [shape: bf16[2,128,32], index: 12, kind: input, shape index: {}]   ;;  %s2412_s13 = inlined_call_operand.vmem [shape: f32[2,1,32], index: 13, kind: input, shape index: {}]   ;;  %s2413_s14 = inlined_call_operand.vmem [shape: f32[16,32], index: 14, kind: output, shape index: {}, may-alias: {0,14}]  }
   0x1   :  { %2418 = sst [smem:[#allocation9_spill]] %s2399_s0  ;;  %s2126_s15 = smov 0  }
   0x2   :  { %2419 = sst [smem:[#allocation10_spill]] %s2400_s1  ;;  %s2128_s16 = smov 0  }
   0x3   :  { %2420 = sst [smem:[#allocation11_spill]] %s2402_s3  ;;  %s2130_s17 = smov 0  }
   0x4   :  { %2421 = sst [smem:[#allocation12_spill]] %s2403_s4 }
   0x5   :  { %2422 = sst [smem:[#allocation13_spill]] %s2405_s6 }
   0x6   :  { %2423 = sst [smem:[#allocation14_spill]] %s2413_s14 }
   0x7 LB: > { %2424 = sst [smem:[#allocation3_spill]] %s2013_s29  ;;  %s33_s18 = sadd.s32 1, %s2021_s15  ;;  %s2029_s17 = sphi %s2130_s17, %s24_s17   ;;  %s2025_s16 = sphi %s2128_s16, %s2448_s16   ;;  %s2021_s15 = sphi %s2126_s15, %s2447_s15   ;;  %s2017_s30 = sphi %s2124_s30, %s2446_s30   ;;  %s2013_s29 = sphi %s2122_s29, %s2445_s29  }
   0x8   : > { %2425 = sst [smem:[#allocation4_spill]] %s2021_s15  ;;  %s36_s19 = sadd.s32 1, %s2025_s16 }
   0x9   : > { %2426 = sst [smem:[#allocation5_spill]] %s2025_s16  ;;  %p34_p0 = scmp.ge.s32.totalorder %s33_s18, 2 }
   0xa   : > { %2427 = sst [smem:[#allocation6_spill]] %s2029_s17  ;;  %p1719_p1 = scmp.ge.s32.totalorder %s2029_s17, 1 }
   0xb   : > { %p527_p2 = scmp.lt.s32.totalorder %s2029_s17, 5  ;;  %s2450_s18 = smov (%p34_p0, %s33_s18), 0 }
   0xc   : > { %2428 = sst [smem:[#allocation7_spill]] %s2450_s18  ;;  %s2452_s19 = smov (!%p34_p0, %s36_s19), %s2025_s16 }
   0xd   : > { %p528_p3 = pnand %p1719_p1, %p527_p2  ;;  %p38_p4 = scmp.ge.s32.totalorder %s2452_s19, 2 }
   0xe   : > { %p615_p5 = scmp.lt.s32.totalorder (!%p528_p3), %s2017_s30, 1  ;;  %p619_p6 = scmp.lt.s32.totalorder (!%p528_p3), %s2013_s29, 1 }
   0xf   : > { %s2454_s19 = smov (%p38_p4, %s2452_s19), 0  ;;  %531 = sbr.rel (%p528_p3) target bundleno = 2624 (0xa40), region = 76 }
  0x10   : > { %2429 = sst [smem:[#allocation8_spill]] %s2454_s19  ;;  %s2430_s0 = sld [smem:[#allocation9_spill]] (!%p528_p3) }
  0x11   : > { %s2432_s4 = sld [smem:[#allocation12_spill]] (!%p528_p3)  ;;  %s2433_s6 = sld [smem:[#allocation13_spill]] (!%p528_p3) }
  0x16   : > { %s2456_s30 = smov (!%p615_p5, %s2017_s30), 1 }
  0x17   : > { %s2156_s20 = scalar_select %p619_p6, %s2013_s29, 1 }
  0x18   : > { %s1720_s21 = sshll.u32 %s2456_s30, 3 }
  0x19   : > { %s618_s24 = scalar_lea.vmem %s2430_s0, %s1720_s21  ;;  %s1767_s16 = sshll.u32 %s2156_s20, 4 }
  0x1a   : > { %s2173_s1 = scalar_lea.vmem %s2432_s4, %s1767_s16  ;;  %s2182_s0 = scalar_lea.vmem %s2433_s6, %s1767_s16 }
  0x1b   : > { %s2199_s30 = scalar_lea.vmem %s2409_s10, %s1767_s16  ;;  %s654_s14 = scalar_lea.vmem %s2410_s11, %s2156_s20 }
  0x1c   : > { %s1770_s6 = sshll.u32 %s2156_s20, 6  ;;  %s662_s19 = scalar_lea.vmem %s2412_s13, %s2156_s20 }
  0x1d   : > { %s2213_s27 = scalar_lea.vmem %s2411_s12, %s1770_s6  ;;  %s2434_s4 = sld [smem:[#allocation14_spill]] }
  0x1e   : > { %s2435_s16 = sld [smem:[#allocation3_spill]] }
  0x23   : > { %s2218_s3 = scalar_lea.vmem %s2434_s4, %s1720_s21 }
  0x24   : > { %p1730_p7 = scmp.ne.s32.totalorder %s2435_s16, 0 }
  0x25   : > { %v672_v0 = vld [vmem:[%s618_s24] sm:$0xff] (!%p1730_p7)  ;;  %vm673_vm0 = vcmask (!%p1730_p7), 261120  }
  0x26   : > { %671 = sbr.rel (%p1730_p7) target bundleno = 45 (0x2d), region = 80  ;;  %674 = vst.msk [vmem:[%s2218_s3] sm:$0xff] (!%p1730_p7), %vm673_vm0, %v672_v0 }
  0x2d PF: > { %v2223_v1 = vld [vmem:[%s2218_s3] sm:$0xff]  ;;  %vm678_vm1 = vcmask 261120   ;;  %v2031_v9 = vmov 0.0   ;;  %vm2032_vm2 = vmmov 0   ;;  %v1954_v10 = vld [vmem:[%s2173_s1 + $0x8] sm:$0xff]   ;;  %s2437_s29 = sld [smem:[#allocation11_spill]]  ;;  %s2439_s26 = scalar_lea.vmem %s2404_s5, %s2156_s20 }
  0x2e   : > { %v679_v2 = vsel %vm678_vm1, %v2223_v1, 0.0  ;;  %v1953_v8 = vld [vmem:[%s2173_s1] sm:$0xff]   ;;  %1805 = vmatprep.subr.bf16.mxu0 %v2031_v9  ;;  %1809 = vmatprep.mubr.msk.bf16.mxu0 %vm2032_vm2, %v2031_v9  ;;  %s2436_s1 = scalar_lea.vmem %s2401_s2, %s2156_s20  ;;  %s2033_s18 = smov 120   ;;  %vm779_vm3 = vcmask 64512   ;;  %vm845_vm4 = vcmask 1043456   ;;  %vm1006_vm5 = vcmask 130112  }
  0x2f   : > { %680 = vadd.xlane.f32.xlu0 %v679_v2  ;;  %1806 = vmatpush3.bf16.msra.mxu0 %v1953_v8  ;;  %v1731_v15 = vld [vmem:[%s2436_s1] ss:$0 sm:$0xff]  ;;  %s2034_s28 = smov 96   ;;  %s2035_s15 = smov 88   ;;  %vm1124_vm6 = vcmask 195712   ;;  %vm1242_vm7 = vcmask 261312  }
  0x30   : > { %1825 = vmatprep.subr.bf16.mxu1 %v2031_v9  ;;  %1807 = vmatprep.subr.bf16.mxu0 %v2031_v9  ;;  %v1733_v21 = vld [vmem:[%s2439_s26] ss:$0 sm:$0xff]  ;;  %s2036_s17 = smov 80   ;;  %s2037_s16 = smov 112  }
  0x31   : > { %1827 = vmatprep.mubr.msk.bf16.mxu1 %vm2032_vm2, %v2031_v9  ;;  %s2038_s4 = smov 72   ;;  %s2039_s6 = smov 104  }
  0x32   : > { %s2440_s24 = sld [smem:[#allocation10_spill]]  ;;  %s2042_s23 = smov 48  }
  0x33   : > { %1808 = vmatpush3.bf16.msra.mxu0 %v1954_v10  ;;  %s2438_s22 = scalar_lea.vmem %s2437_s29, %s2156_s20  ;;  %s2040_s29 = smov 64  }
  0x34   : > { %1813 = vmatprep.subr.bf16.mxu0 %v2031_v9  ;;  %v1732_v17 = vld [vmem:[%s2438_s22] ss:$0 sm:$0xff]  ;;  %s2041_s22 = smov 56   ;;  %s2043_s25 = smov 40  }
  0x35   : > { %s2044_s26 = smov 8  }
  0x38   : > { %v774_v40 = vld [vmem:[%s2440_s24] sm:$0xff] }
  0xbc   : > { %v681_v3 = vpop.xlane.xlu0 %680 }
  0xbd   : > { %v683_v4 = vmul.f32 0.03125, %v681_v3 }
  0xbf   : > { %v684_v5 = vsub.f32 %v2223_v1, %v683_v4 }
  0xc1   : > { %v685_v6 = vmul.f32 %v684_v5, %v684_v5 }
  0xc3   : > { %v686_v7 = vsel %vm678_vm1, %v685_v6, 0.0 }
  0xc4   : > { %687 = vadd.xlane.f32.xlu0 %v686_v7 }
 0x151   : > { %v688_v11 = vpop.xlane.xlu0 %687 }
 0x152   : > { %v689_v12 = vmul.f32 0.03125, %v688_v11 }
 0x154   : > { %v690_v13 = vadd.f32 1e-05, %v689_v12 }
 0x156   : > { %1967 = vrsqrt.f32 %v690_v13 }
 0x160   : > { %v1968_v14 = vpop.eup %1967 }
 0x161   : > { %v692_v16 = vmul.f32 %v1968_v14, %v684_v5 }
 0x163   : > { %v699_v18 = vmul.f32 %v1731_v15, %v692_v16 }
 0x165   : > { %v706_v19 = vadd.f32 %v1732_v17, %v699_v18 }
 0x167   : > { %v707_v20 = vpack.c.bf16 %v706_v19, %v706_v19 }
 0x169   : > { %1810 = vmatmul.mubr.msk.bf16.vlgmr.msra.gmra.mrb[0].mxu0 %vm678_vm1, %v707_v20 }
 0x16a   : > { %1815 = vmatprep.mubr.msk.bf16.mxu0 %vm2032_vm2, %v2031_v9 }
 0x23c   : > { %v768_v22 = vpop.f32.mrb[0].mxu0 }
 0x23d   : > { %v769_v23 = vadd.f32 %v1733_v21, %v768_v22  ;;  %v1811_v24 = vpop.f32.mrb[1].mxu0 }
 0x23e   : > { %v771_v25 = vpop.f32.mrb[2].mxu0 }
 0x23f   : > { %v2257_v26 = vpack.c.bf16 %v769_v23, %v769_v23  ;;  %v1812_v27 = vpop.f32.mrb[3].mxu0 }
 0x241   : > { %890 = vrot.lane.b32.xlu0 %v2257_v26, %s2033_s18  ;;  %777 = vrot.lane.b32.xlu1 %v2257_v26, %s2034_s28  ;;  %s2045_s18 = smov 16   ;;  %s2046_s28 = smov 24  }
 0x245   : > { %892 = vrot.lane.b32.xlu1 %v2257_v26, %s2035_s15 }
 0x249   : > { %1010 = vrot.lane.b32.xlu1 %v2257_v26, %s2036_s17  ;;  %s2441_s17 = scalar_lea.vmem %s2406_s7, %s2156_s20 }
 0x24d   : > { %1008 = vrot.lane.b32.xlu1 %v2257_v26, %s2037_s16 }
 0x251   : > { %1128 = vrot.lane.b32.xlu1 %v2257_v26, %s2038_s4 }
 0x255   : > { %1126 = vrot.lane.b32.xlu1 %v2257_v26, %s2039_s6  ;;  %s2442_s6 = scalar_lea.vmem %s2407_s8, %s2156_s20 }
 0x2b3   : > { %v778_v28 = vpop.permute.xlu1 %777  ;;  %v891_v33 = vpop.permute.xlu0 %890 }
 0x2b4   : > { %v784_v29 = vsel %vm779_vm3, %v778_v28, 0 }
 0x2b5   : > { %1814 = vmatpush3.bf16.xpose.msra.mxu0 %v784_v29 }
 0x2b6   : > { %1819 = vmatprep.subr.bf16.mxu0 %v2031_v9 }
 0x2b7   : > { %v893_v30 = vpop.permute.xlu1 %892 }
 0x2b8   : > { %v898_v31 = vsel %vm779_vm3, %v893_v30, 0 }
 0x2b9   : > { %1826 = vmatpush3.bf16.xpose.msra.mxu1 %v898_v31 }
 0x2ba   : > { %1837 = vmatprep.subr.bf16.mxu1 %v2031_v9 }
 0x2bb   : > { %v1011_v32 = vpop.permute.xlu1 %1010 }
 0x2bc   : > { %1816 = vmatmul.mubr.msk.bf16.vlgmr.msra.gmra.mrb[4].mxu0 %vm779_vm3, %v2257_v26  ;;  %v1016_v35 = vsel %vm779_vm3, %v1011_v32, 0 }
 0x2bd   : > { %1821 = vmatprep.mubr.msk.bf16.mxu0 %vm2032_vm2, %v2031_v9 }
 0x2bf   : > { %v1009_v34 = vpop.permute.xlu1 %1008 }
 0x2c0   : > { %1828 = vmatmul.mubr.msk.bf16.vlgmr.msra.gmra.mrb[0].mxu1 %vm779_vm3, %v891_v33 }
 0x2c1   : > { %1838 = vmatpush3.bf16.xpose.msra.mxu1 %v1016_v35  ;;  %1839 = vmatprep.mubr.msk.bf16.mxu1 %vm2032_vm2, %v2031_v9 }
 0x2c2   : > { %1849 = vmatprep.subr.bf16.mxu1 %v2031_v9 }
 0x2c3   : > { %v1129_v36 = vpop.permute.xlu1 %1128 }
 0x2c4   : > { %v1134_v37 = vsel %vm779_vm3, %v1129_v36, 0 }
 0x2c7   : > { %v1127_v38 = vpop.permute.xlu1 %1126 }
 0x2c8   : > { %1840 = vmatmul.mubr.msk.bf16.vlgmr.msra.gmra.mrb[4].mxu1 %vm779_vm3, %v1009_v34 }
 0x2c9   : > { %1850 = vmatpush3.bf16.xpose.msra.mxu1 %v1134_v37  ;;  %1851 = vmatprep.mubr.msk.bf16.mxu1 %vm2032_vm2, %v2031_v9 }
 0x2ca   : > { %1861 = vmatprep.subr.bf16.mxu1 %v2031_v9 }
 0x2d0   : > { %1852 = vmatmul.mubr.msk.bf16.vlgmr.msra.gmra.mrb[8].mxu1 %vm779_vm3, %v1127_v38 }
 0x2d1   : > { %1865 = vmatprep.mubr.msk.bf16.mxu1 %vm2032_vm2, %v2031_v9 }
 0x38f   : > { %v820_v39 = vpop.f32.mrb[4].mxu0 }
 0x390   : > { %v826_v41 = vmul.f32 0.35355338, %v820_v39  ;;  %v1817_v42 = vpop.f32.mrb[5].mxu0 }
 0x391   : > { %v823_v43 = vpop.f32.mrb[6].mxu0 }
 0x392   : > { %v1818_v44 = vpop.f32.mrb[7].mxu0  ;;  %v827_v45 = vadd.f32 %v826_v41, %v774_v40 }
 0x393   : > { %v934_v46 = vpop.f32.mrb[0].mxu1 }
 0x394   : > { %v940_v47 = vmul.f32 0.35355338, %v934_v46  ;;  %v1829_v48 = vpop.f32.mrb[1].mxu1  ;;  %v828_v49 = vsel %vm779_vm3, %v827_v45, -inf }
 0x395   : > { %v937_v50 = vpop.f32.mrb[2].mxu1  ;;  %829 = vmax.xlane.f32.xlu1 %v828_v49 }
 0x396   : > { %v1830_v51 = vpop.f32.mrb[3].mxu1  ;;  %v941_v52 = vadd.f32 %v940_v47, %v774_v40 }
 0x398   : > { %v942_v53 = vsel %vm779_vm3, %v941_v52, -inf }
 0x399   : > { %943 = vmax.xlane.f32.xlu0 %v942_v53 }
 0x39b   : > { %v1052_v54 = vpop.f32.mrb[4].mxu1 }
 0x39c   : > { %v1058_v55 = vmul.f32 0.35355338, %v1052_v54  ;;  %v1841_v56 = vpop.f32.mrb[5].mxu1 }
 0x39d   : > { %v1055_v57 = vpop.f32.mrb[6].mxu1 }
 0x39e   : > { %v1842_v58 = vpop.f32.mrb[7].mxu1  ;;  %v1059_v59 = vadd.f32 %v1058_v55, %v774_v40 }
 0x39f   : > { %v1955_v58 = vld [vmem:[%s2182_s0] sm:$0xff]  }
 0x3a0   : > { %v1060_v60 = vsel %vm779_vm3, %v1059_v59, -inf  ;;  %1862 = vmatpush3.bf16.msra.mxu1 %v1955_v58 }
 0x3a1   : > { %1061 = vmax.xlane.f32.xlu1 %v1060_v60  ;;  %1863 = vmatprep.subr.bf16.mxu1 %v2031_v9 }
 0x3a3   : > { %v1170_v61 = vpop.f32.mrb[8].mxu1 }
 0x3a4   : > { %v1176_v62 = vmul.f32 0.35355338, %v1170_v61  ;;  %v1853_v63 = vpop.f32.mrb[9].mxu1 }
 0x3a5   : > { %v1173_v0 = vpop.f32.mrb[10].mxu1 }
 0x3a6   : > { %v1854_v2 = vpop.f32.mrb[11].mxu1  ;;  %v1177_v3 = vadd.f32 %v1176_v62, %v774_v40 }
 0x3a8   : > { %v1178_v4 = vsel %vm779_vm3, %v1177_v3, -inf }
 0x3a9   : > { %1179 = vmax.xlane.f32.xlu0 %v1178_v4 }
 0x422   : > { %v830_v5 = vpop.xlane.xlu1 %829 }
 0x423   : > { %v831_v6 = vsub.f32 %v827_v45, %v830_v5 }
 0x425   : > { %v832_v7 = vmul.f32 1.442695, %v831_v6 }
 0x426   : > { %v944_v8 = vpop.xlane.xlu0 %943 }
 0x427   : > { %1969 = vpow2.f32 %v832_v7  ;;  %v945_v10 = vsub.f32 %v941_v52, %v944_v8 }
 0x429   : > { %v946_v11 = vmul.f32 1.442695, %v945_v10 }
 0x42b   : > { %1971 = vpow2.f32 %v946_v11  ;;  %v1745_v11 = vld [vmem:[%s2441_s17] ss:$0 sm:$0xff] }
 0x42e   : > { %v1062_v21 = vpop.xlane.xlu1 %1061 }
 0x42f   : > { %v1063_v22 = vsub.f32 %v1059_v59, %v1062_v21  ;;  %v1956_v59 = vld [vmem:[%s2182_s0 + $0x8] sm:$0xff]  }
 0x430   : > { %1864 = vmatpush3.bf16.msra.mxu1 %v1956_v59 }
 0x431   : > { %v1970_v12 = vpop.eup %1969  ;;  %v1064_v23 = vmul.f32 1.442695, %v1063_v22  ;;  %1877 = vmatprep.subr.bf16.mxu1 %v2031_v9 }
 0x432   : > { %v834_v13 = vsel %vm779_vm3, %v1970_v12, 0.0 }
 0x433   : > { %835 = vadd.xlane.f32.xlu1 %v834_v13 }
 0x435   : > { %v1972_v14 = vpop.eup %1971 }
 0x436   : > { %v1180_v15 = vpop.xlane.xlu0 %1179  ;;  %v948_v16 = vsel %vm779_vm3, %v1972_v14, 0.0 }
 0x437   : > { %v1181_v17 = vsub.f32 %v1177_v3, %v1180_v15  ;;  %949 = vadd.xlane.f32.xlu0 %v948_v16 }
 0x439   : > { %v1182_v18 = vmul.f32 1.442695, %v1181_v17 }
 0x43b   : > { %1973 = vpow2.f32 %v1182_v18 }
 0x43c   : > { %1975 = vpow2.f32 %v1064_v23 }
 0x444   : > { %840 = vrot.lane.b32.xlu1 %v2257_v26, %s2040_s29 }
 0x445   : > { %v1974_v19 = vpop.eup %1973 }
 0x446   : > { %v1184_v20 = vsel %vm779_vm3, %v1974_v19, 0.0  ;;  %v1976_v24 = vpop.eup %1975 }
 0x447   : > { %1185 = vadd.xlane.f32.xlu0 %v1184_v20  ;;  %v1066_v25 = vsel %vm779_vm3, %v1976_v24, 0.0 }
 0x45d   : > { %954 = vrot.lane.b32.xlu0 %v2257_v26, %s2041_s22 }
 0x468   : > { %1067 = vadd.xlane.f32.xlu1 %v1066_v25 }
 0x479   : > { %1072 = vrot.lane.b32.xlu1 %v2257_v26, %s2042_s23 }
 0x47d   : > { %1190 = vrot.lane.b32.xlu1 %v2257_v26, %s2043_s25 }
 0x4c0   : > { %v836_v27 = vpop.xlane.xlu1 %835 }
 0x4c1   : > { %1977 = vrcp.f32 %v836_v27 }
 0x4c4   : > { %v841_v28 = vpop.permute.xlu1 %840  ;;  %v950_v30 = vpop.xlane.xlu0 %949 }
 0x4c5   : > { %v847_v29 = vsel %vm845_vm4, %v841_v28, 0  ;;  %1979 = vrcp.f32 %v950_v30  ;;  %v1749_v30 = vld [vmem:[%s2442_s6] ss:$0 sm:$0xff] }
 0x4c6   : > { %1820 = vmatpush3.bf16.msra.mxu0 %v847_v29 }
 0x4c7   : > { %1831 = vmatprep.subr.bf16.mxu0 %v2031_v9 }
 0x4cb   : > { %v1978_v31 = vpop.eup %1977 }
 0x4cc   : > { %v838_v32 = vmul.f32 %v1978_v31, %v1970_v12 }
 0x4ce   : > { %v839_v33 = vpack.c.bf16 %v838_v32, %v838_v32 }
 0x4cf   : > { %v1980_v26 = vpop.eup %1979 }
 0x4d0   : > { %1822 = vmatmul.mubr.msk.bf16.vlgmr.msra.gmra.mrb[8].mxu0 %vm779_vm3, %v839_v33  ;;  %v952_v35 = vmul.f32 %v1980_v26, %v1972_v14 }
 0x4d1   : > { %1833 = vmatprep.mubr.msk.bf16.mxu0 %vm2032_vm2, %v2031_v9 }
 0x4d2   : > { %v953_v38 = vpack.c.bf16 %v952_v35, %v952_v35  ;;  %v1959_v35 = vld [vmem:[%s2213_s27] sm:$0xff]  }
 0x4d4   : > { %v1186_v34 = vpop.xlane.xlu0 %1185 }
 0x4d8   : > { %v955_v36 = vpop.permute.xlu0 %954 }
 0x4d9   : > { %v960_v37 = vsel %vm845_vm4, %v955_v36, 0  ;;  %v1960_v36 = vld [vmem:[%s2213_s27 + $0x8] sm:$0xff]  }
 0x4da   : > { %1832 = vmatpush3.bf16.msra.mxu0 %v960_v37  ;;  %v1961_v37 = vld [vmem:[%s2213_s27 + $0x10] sm:$0xff]  }
 0x4db   : > { %1843 = vmatprep.subr.bf16.mxu0 %v2031_v9 }
 0x4dd   : > { %1834 = vmatmul.mubr.msk.bf16.vlgmr.msra.gmra.mrb[12].mxu0 %vm779_vm3, %v953_v38  ;;  %v1962_v38 = vld [vmem:[%s2213_s27 + $0x18] sm:$0xff]  }
 0x4de   : > { %1845 = vmatprep.mubr.msk.bf16.mxu0 %vm2032_vm2, %v2031_v9 }
 0x4f5   : > { %v1068_v39 = vpop.xlane.xlu1 %1067 }
 0x4f6   : > { %1981 = vrcp.f32 %v1068_v39  ;;  %v1963_v39 = vld [vmem:[%s2213_s27 + $0x20] sm:$0xff]  }
 0x4f7   : > { %1983 = vrcp.f32 %v1186_v34 }
 0x4f9   : > { %v1073_v40 = vpop.permute.xlu1 %1072 }
 0x4fa   : > { %v1078_v41 = vsel %vm845_vm4, %v1073_v40, 0  ;;  %v1964_v40 = vld [vmem:[%s2213_s27 + $0x28] sm:$0xff]  }
 0x4fb   : > { %1844 = vmatpush3.bf16.msra.mxu0 %v1078_v41  ;;  %v1965_v41 = vld [vmem:[%s2213_s27 + $0x30] sm:$0xff]  }
 0x4fc   : > { %1855 = vmatprep.subr.bf16.mxu0 %v2031_v9 }
 0x4fd   : > { %v1191_v44 = vpop.permute.xlu1 %1190 }
 0x4fe   : > { %v1196_v47 = vsel %vm845_vm4, %v1191_v44, 0 }
 0x500   : > { %v1982_v42 = vpop.eup %1981 }
 0x501   : > { %v1070_v43 = vmul.f32 %v1982_v42, %v1976_v24  ;;  %v1984_v46 = vpop.eup %1983  ;;  %v1957_v24 = vld [vmem:[%s2199_s30] sm:$0xff]   ;;  %v1966_v42 = vld [vmem:[%s2213_s27 + $0x38] sm:$0xff]  }
 0x502   : > { %v1188_v48 = vmul.f32 %v1984_v46, %v1974_v19 }
 0x503   : > { %v1071_v45 = vpack.c.bf16 %v1070_v43, %v1070_v43  ;;  %v1751_v43 = vld [vmem:[%s654_s14] ss:$0 sm:$0xff] }
 0x504   : > { %v1189_v49 = vpack.c.bf16 %v1188_v48, %v1188_v48 }
 0x505   : > { %1846 = vmatmul.mubr.msk.bf16.vlgmr.msra.gmra.mrb[16].mxu0 %vm779_vm3, %v1071_v45 }
 0x506   : > { %1856 = vmatpush3.bf16.msra.mxu0 %v1196_v47  ;;  %1857 = vmatprep.mubr.msk.bf16.mxu0 %vm2032_vm2, %v2031_v9 }
 0x507   : > { %1869 = vmatprep.subr.bf16.mxu0 %v2031_v9 }
 0x50d   : > { %1858 = vmatmul.mubr.msk.bf16.vlgmr.msra.gmra.mrb[20].mxu0 %vm779_vm3, %v1189_v49 }
 0x50e   : > { %1873 = vmatprep.mubr.msk.bf16.mxu0 %vm2032_vm2, %v2031_v9  ;;  %1870 = vmatpush3.bf16.msra.mxu0 %v1957_v24 }
 0x50f   : > { %1871 = vmatprep.subr.bf16.mxu0 %v2031_v9 }
 0x5a3   : > { %v883_v50 = vpop.f32.mrb[8].mxu0 }
 0x5a4   : > { %889 = vst.msk [vmem:[#allocation2] sm:$0xff] %vm779_vm3, %v883_v50  ;;  %v1823_v51 = vpop.f32.mrb[9].mxu0 }
 0x5a5   : > { %v886_v52 = vpop.f32.mrb[10].mxu0 }
 0x5a6   : > { %v1824_v53 = vpop.f32.mrb[11].mxu0 }
 0x5b0   : > { %v996_v54 = vpop.f32.mrb[12].mxu0 }
 0x5b1   : > { %1003 = vrot.lane.b32.xlu0 %v996_v54, %s2044_s26  ;;  %v1835_v55 = vpop.f32.mrb[13].mxu0 }
 0x5b2   : > { %v999_v56 = vpop.f32.mrb[14].mxu0  ;;  %v1756_v55 = vld [vmem:[%s662_s19] ss:$0 sm:$0xff] }
 0x5b3   : > { %v1836_v57 = vpop.f32.mrb[15].mxu0 }
 0x5d8   : > { %v1114_v60 = vpop.f32.mrb[16].mxu0 }
 0x5d9   : > { %1121 = vrot.lane.b32.xlu1 %v1114_v60, %s2045_s18  ;;  %v1847_v61 = vpop.f32.mrb[17].mxu0 }
 0x5da   : > { %v1117_v62 = vpop.f32.mrb[18].mxu0 }
 0x5db   : > { %v1848_v63 = vpop.f32.mrb[19].mxu0 }
 0x5e0   : > { %v1232_v0 = vpop.f32.mrb[20].mxu0 }
 0x5e1   : > { %1239 = vrot.lane.b32.xlu0 %v1232_v0, %s2046_s28  ;;  %v1859_v2 = vpop.f32.mrb[21].mxu0 }
 0x5e2   : > { %v1235_v3 = vpop.f32.mrb[22].mxu0 }
 0x5e3   : > { %v1860_v4 = vpop.f32.mrb[23].mxu0 }
 0x623   : > { %v1004_v5 = vpop.permute.xlu0 %1003 }
 0x624   : > { %1007 = vst.msk [vmem:[#allocation2] sm:$0xff] %vm1006_vm5, %v1004_v5 }
 0x64b   : > { %v1122_v6 = vpop.permute.xlu1 %1121 }
 0x64c   : > { %1125 = vst.msk [vmem:[#allocation2] sm:$0xff] %vm1124_vm6, %v1122_v6 }
 0x653   : > { %v1240_v7 = vpop.permute.xlu0 %1239 }
 0x654   : > { %1243 = vst.msk [vmem:[#allocation2] sm:$0xff] %vm1242_vm7, %v1240_v7 }
 0x65b   : > { %v1244_v8 = vld [vmem:[#allocation2] sm:$0xff] }
 0x65c   : > { %v1245_v10 = vpack.c.bf16 %v1244_v8, %v1244_v8 }
 0x65e   : > { %1866 = vmatmul.mubr.msk.bf16.vlgmr.msra.gmra.mrb[12].mxu1 %vm678_vm1, %v1245_v10 }
 0x65f   : > { %1893 = vmatprep.mubr.msk.bf16.mxu1 %vm2032_vm2, %v2031_v9  ;;  %1878 = vmatpush3.bf16.msra.mxu1 %v1959_v35 }
 0x660   : > { %1879 = vmatprep.subr.bf16.mxu1 %v2031_v9 }
 0x663   : > { %1880 = vmatpush3.bf16.msra.mxu1 %v1960_v36 }
 0x664   : > { %1881 = vmatprep.subr.bf16.mxu1 %v2031_v9 }
 0x667   : > { %1882 = vmatpush3.bf16.msra.mxu1 %v1961_v37 }
 0x668   : > { %1883 = vmatprep.subr.bf16.mxu1 %v2031_v9 }
 0x66b   : > { %1884 = vmatpush3.bf16.msra.mxu1 %v1962_v38 }
 0x66c   : > { %1885 = vmatprep.subr.bf16.mxu1 %v2031_v9 }
 0x66f   : > { %1886 = vmatpush3.bf16.msra.mxu1 %v1963_v39 }
 0x670   : > { %1887 = vmatprep.subr.bf16.mxu1 %v2031_v9 }
 0x673   : > { %1888 = vmatpush3.bf16.msra.mxu1 %v1964_v40 }
 0x674   : > { %1889 = vmatprep.subr.bf16.mxu1 %v2031_v9 }
 0x677   : > { %1890 = vmatpush3.bf16.msra.mxu1 %v1965_v41 }
 0x678   : > { %1891 = vmatprep.subr.bf16.mxu1 %v2031_v9 }
 0x67b   : > { %1892 = vmatpush3.bf16.msra.mxu1 %v1966_v42 }
 0x731   : > { %v1306_v12 = vpop.f32.mrb[12].mxu1 }
 0x732   : > { %v1307_v13 = vadd.f32 %v1745_v11, %v1306_v12  ;;  %v1867_v14 = vpop.f32.mrb[13].mxu1 }
 0x733   : > { %v1309_v15 = vpop.f32.mrb[14].mxu1 }
 0x734   : > { %v2336_v16 = vadd.f32 %v1307_v13, %v2223_v1  ;;  %v1868_v17 = vpop.f32.mrb[15].mxu1  ;;  %v1958_v1 = vld [vmem:[%s2199_s30 + $0x8] sm:$0xff]   ;;  %s2443_s30 = scalar_lea.vmem %s2408_s9, %s2156_s20 }
 0x735   : > { %1872 = vmatpush3.bf16.msra.mxu0 %v1958_v1  ;;  %v1750_v32 = vld [vmem:[%s2443_s30] ss:$0 sm:$0xff] }
 0x736   : > { %v1315_v18 = vsel %vm678_vm1, %v2336_v16, 0.0 }
 0x737   : > { %1316 = vadd.xlane.f32.xlu1 %v1315_v18 }
 0x7c4   : > { %v1317_v19 = vpop.xlane.xlu1 %1316 }
 0x7c5   : > { %v1318_v20 = vmul.f32 0.03125, %v1317_v19 }
 0x7c7   : > { %v1319_v21 = vsub.f32 %v2336_v16, %v1318_v20 }
 0x7c9   : > { %v1320_v22 = vmul.f32 %v1319_v21, %v1319_v21 }
 0x7cb   : > { %v1321_v23 = vsel %vm678_vm1, %v1320_v22, 0.0 }
 0x7cc   : > { %1322 = vadd.xlane.f32.xlu0 %v1321_v23 }
 0x859   : > { %v1323_v25 = vpop.xlane.xlu0 %1322 }
 0x85a   : > { %v1324_v27 = vmul.f32 0.03125, %v1323_v25 }
 0x85c   : > { %v1325_v28 = vadd.f32 1e-05, %v1324_v27 }
 0x85e   : > { %1985 = vrsqrt.f32 %v1325_v28 }
 0x868   : > { %v1986_v29 = vpop.eup %1985 }
 0x869   : > { %v1327_v31 = vmul.f32 %v1986_v29, %v1319_v21 }
 0x86b   : > { %v1334_v33 = vmul.f32 %v1749_v30, %v1327_v31 }
 0x86d   : > { %v1341_v26 = vadd.f32 %v1750_v32, %v1334_v33 }
 0x86f   : > { %v1342_v34 = vpack.c.bf16 %v1341_v26, %v1341_v26 }
 0x871   : > { %1874 = vmatmul.mubr.msk.bf16.vlgmr.msra.gmra.mrb[24].mxu0 %vm678_vm1, %v1342_v34 }
 0x944   : > { %v1403_v44 = vpop.f32.mrb[24].mxu0 }
 0x945   : > { %v1404_v45 = vadd.f32 %v1751_v43, %v1403_v44  ;;  %v1875_v46 = vpop.f32.mrb[25].mxu0 }
 0x946   : > { %v1406_v47 = vpop.f32.mrb[26].mxu0 }
 0x947   : > { %v1755_v48 = vmul.f32 -1.702, %v1404_v45  ;;  %v1876_v49 = vpop.f32.mrb[27].mxu0 }
 0x949   : > { %v1411_v50 = vmul.f32 1.442695, %v1755_v48 }
 0x94b   : > { %1987 = vpow2.f32 %v1411_v50 }
 0x955   : > { %v1988_v51 = vpop.eup %1987 }
 0x956   : > { %v1413_v52 = vadd.f32 1.0, %v1988_v51 }
 0x958   : > { %1989 = vrcp.f32 %v1413_v52 }
 0x962   : > { %v1990_v9 = vpop.eup %1989 }
 0x963   : > { %v1416_v53 = vmul.f32 %v1990_v9, %v1404_v45 }
 0x965   : > { %v1417_v54 = vpack.c.bf16 %v1416_v53, %v1416_v53 }
 0x967   : > { %1894 = vmatmul.mubr.bf16.vlgmr.msra.gmra.mrb[16].mxu1 %v1417_v54 }
 0xa3a   : > { %v1523_v56 = vpop.f32.mrb[16].mxu1 }
 0xa3b   : > { %v1524_v57 = vadd.f32 %v1756_v55, %v1523_v56  ;;  %v1895_v58 = vpop.f32.mrb[17].mxu1 }
 0xa3c   : > { %v1526_v59 = vpop.f32.mrb[18].mxu1 }
 0xa3d   : > { %v1529_v60 = vadd.f32 %v1524_v57, %v2336_v16  ;;  %v1896_v61 = vpop.f32.mrb[19].mxu1 }
 0xa3f   : > { %1530 = vst.msk [vmem:[%s2218_s3] sm:$0xff] %vm678_vm1, %v1529_v60 }
 0xa40 PF: > { %s2444_s14 = sld [smem:[#allocation6_spill]]  ;;  %s2445_s29 = sld [smem:[#allocation4_spill]] }
 0xa41   : > { %s2446_s30 = sld [smem:[#allocation5_spill]]  ;;  %s2447_s15 = sld [smem:[#allocation7_spill]] }
 0xa42   : > { %s2448_s16 = sld [smem:[#allocation8_spill]] }
 0xa46   : > { %s24_s17 = sadd.s32 1, %s2444_s14  }
 0xa47   : > { %p21_p8 = scmp.ge.s32.totalorder %s24_s17, 6  }
 0xa49   :  { %23 = sbr.rel (!%p21_p8) target bundleno = 7 (0x7), region = 146 }

</bundles_post_ra>
